<compile_context>
chip_gen: v7x
topology: tpu7x:2x2x1
jax: 0.10.0
libtpu: 0.0.40
codegen_flags: <defaults>
</compile_context>

<pallas_src>
import numpy as np
import jax
import jax.numpy as jnp
from jax.experimental import pallas as pl
from jax.experimental.pallas import tpu as pltpu

_KH = 5
_KW = 5


# ---------------------------------------------------------------------------
# Fused forward kernel (one grid step == one sample, everything VMEM resident)
# ---------------------------------------------------------------------------
def _lenet_fused_kernel(x_ref, m1_ref, c1b_ref, s1r_ref, s1c_ref,
                        m2_ref, c2b_ref, s2r_ref, s2c_ref,
                        g1_ref, f1b_ref, f2w_ref, f2b_ref, f3w_ref, f3b_ref,
                        o_ref):
    kk1 = m1_ref.shape[0]        # conv1 kernel width (5)
    kk2 = m2_ref.shape[0]        # conv2 kernel width (5)
    ow1 = s1r_ref.shape[2]       # conv1 output width (28)
    ow2 = s2r_ref.shape[2]       # conv2 output width (10)
    nw_fc = g1_ref.shape[0]      # pooled width feeding fc1 (5)

    def conv_relu(act_slice, m_ref, b_ref, n_k):
        # out[ow, (co,oh)] = relu( sum_kw act[ow+kw, (ci,h)] @ M[kw] + b )
        acc = jnp.dot(act_slice(0), m_ref[0], preferred_element_type=jnp.float32)
        for k in range(1, n_k):
            acc = acc + jnp.dot(act_slice(k), m_ref[k],
                                preferred_element_type=jnp.float32)
        return jnp.maximum(acc + b_ref[...], 0.0)

    def maxpool(a, sr_ref, sc_ref):
        # 2x2/2 max pool on [ow, (c,oh)] tiles: even/odd row selection + max
        # (pools width), then even/odd column selection + max (pools height).
        rows = jnp.maximum(
            jnp.dot(sr_ref[0], a, preferred_element_type=jnp.float32),
            jnp.dot(sr_ref[1], a, preferred_element_type=jnp.float32))
        return jnp.maximum(
            jnp.dot(rows, sc_ref[0], preferred_element_type=jnp.float32),
            jnp.dot(rows, sc_ref[1], preferred_element_type=jnp.float32))

    # conv1 + relu + pool : [32, 3*32] -> [28, 6*28] -> [14, 6*14]
    c1 = conv_relu(lambda k: x_ref[0, k:k + ow1, :], m1_ref, c1b_ref, kk1)
    p1 = maxpool(c1, s1r_ref, s1c_ref)
    # conv2 + relu + pool : [14, 6*14] -> [10, 16*10] -> [5, 16*5]
    c2 = conv_relu(lambda k: p1[k:k + ow2, :], m2_ref, c2b_ref, kk2)
    p2 = maxpool(c2, s2r_ref, s2c_ref)

    # fc1 (+relu): contract over (c, h) per pooled column w, accumulate.
    h = jnp.dot(p2[0:1, :], g1_ref[0], preferred_element_type=jnp.float32)
    for w in range(1, nw_fc):
        h = h + jnp.dot(p2[w:w + 1, :], g1_ref[w],
                        preferred_element_type=jnp.float32)
    h = jnp.maximum(h + f1b_ref[...], 0.0)
    # fc2 (+relu), fc3
    h = jnp.maximum(
        jnp.dot(h, f2w_ref[...], preferred_element_type=jnp.float32)
        + f2b_ref[...], 0.0)
    h = (jnp.dot(h, f3w_ref[...], preferred_element_type=jnp.float32)
         + f3b_ref[...])
    o_ref[0, :, :] = h                                  # [1, 10] logits row


# ---------------------------------------------------------------------------
# Host-side weight / constant preparation (no activation traffic here)
# ---------------------------------------------------------------------------
def _conv_band_matrices_t(w, h_in):
    """w: [Co, Ci, KH, KW] -> [KW, Ci*h_in, Co*OH] banded matrices such that
    conv_out[ow, (co,oh)] = sum_kw act[ow+kw, (ci,h)] @ M[kw]."""
    co, ci, kh, kw = w.shape
    oh = h_in - kh + 1
    # d[k, q, h] = 1  iff  h == q + k
    d = (np.arange(h_in)[None, None, :]
         == (np.arange(oh)[None, :, None] + np.arange(kh)[:, None, None]))
    d = jnp.asarray(d.astype(np.float32))                 # [KH, OH, H]
    m = jnp.einsum('oikv,kqh->vihoq', w, d)               # [KW, Ci, H, Co, OH]
    return m.reshape(kw, ci * h_in, co * oh)


def _pool_selectors(channels, oh, ow):
    """0/1 selection matrices for 2x2/2 max pool on an [OW, C*OH] tile:
    srow[par] (left-mult) pools the width axis, scol[par] (right-mult) pools
    the height axis inside the (c, oh) lane grouping."""
    ph, pw = oh // 2, ow // 2
    srow = np.zeros((2, pw, ow), np.float32)
    for par in range(2):
        for p in range(pw):
            srow[par, p, 2 * p + par] = 1.0
    scol = np.zeros((2, channels * oh, channels * ph), np.float32)
    for par in range(2):
        for c in range(channels):
            for p in range(ph):
                scol[par, c * oh + 2 * p + par, c * ph + p] = 1.0
    return jnp.asarray(srow), jnp.asarray(scol)


def _resident_spec(shape):
    """Full-array block with a constant index map: DMA'd once, stays in VMEM."""
    nd = len(shape)
    return pl.BlockSpec(shape, lambda i, _nd=nd: (0,) * _nd)


# ---------------------------------------------------------------------------
# Model
# ---------------------------------------------------------------------------
def init_params(key):
    ks = jax.random.split(key, 10)

    def unif(k, shape, fan_in):
        bound = 1.0 / np.sqrt(fan_in)
        return jax.random.uniform(k, shape, jnp.float32, -bound, bound)

    return {
        "conv1_w": unif(ks[0], (6, 3, 5, 5), 3 * 5 * 5),
        "conv1_b": unif(ks[1], (6,), 3 * 5 * 5),
        "conv2_w": unif(ks[2], (16, 6, 5, 5), 6 * 5 * 5),
        "conv2_b": unif(ks[3], (16,), 6 * 5 * 5),
        # PyTorch layout: [out_features, in_features]
        "fc1_w": unif(ks[4], (120, 16 * 5 * 5), 16 * 5 * 5),
        "fc1_b": unif(ks[5], (120,), 16 * 5 * 5),
        "fc2_w": unif(ks[6], (84, 120), 120),
        "fc2_b": unif(ks[7], (84,), 120),
        "fc3_w": unif(ks[8], (10, 84), 84),
        "fc3_b": unif(ks[9], (10,), 84),
    }


@jax.jit
def net_forward(params, x):
    # x: [N, 3, 32, 32] (CIFAR-sized; required by fc1 = 16*5*5)
    n, c_in, h_in, w_in = x.shape
    co1 = params["conv1_w"].shape[0]                    # 6
    co2 = params["conv2_w"].shape[0]                    # 16
    fc1_out = params["fc1_w"].shape[0]                  # 120
    n_cls = params["fc3_w"].shape[0]                    # 10

    oh1, ow1 = h_in - _KH + 1, w_in - _KW + 1           # 28, 28
    ph1, pw1 = oh1 // 2, ow1 // 2                       # 14, 14
    oh2, ow2 = ph1 - _KH + 1, pw1 - _KW + 1             # 10, 10
    ph2, pw2 = oh2 // 2, ow2 // 2                       # 5, 5

    # ---- conv1 / pool1 prep ----
    m1 = _conv_band_matrices_t(params["conv1_w"], h_in)           # [5, 96, 168]
    c1b = jnp.repeat(params["conv1_b"], oh1)[None, :]             # [1, 168]
    s1r, s1c = _pool_selectors(co1, oh1, ow1)                     # [2,14,28],[2,168,84]

    # ---- conv2 / pool2 prep ----
    m2 = _conv_band_matrices_t(params["conv2_w"], ph1)            # [5, 84, 160]
    c2b = jnp.repeat(params["conv2_b"], oh2)[None, :]             # [1, 160]
    s2r, s2c = _pool_selectors(co2, oh2, ow2)                     # [2,5,10],[2,160,80]

    # ---- fc prep (match torch.flatten order: c-major, then h, then w) ----
    g1 = params["fc1_w"].reshape(fc1_out, co2, ph2, pw2)          # [o, c, h, w]
    g1 = g1.transpose(3, 1, 2, 0).reshape(pw2, co2 * ph2, fc1_out)  # [5, 80, 120]
    f1b = params["fc1_b"][None, :]
    f2wT, f2b = params["fc2_w"].T, params["fc2_b"][None, :]
    f3wT, f3b = params["fc3_w"].T, params["fc3_b"][None, :]

    # activations live as [w, (c, h)] tiles -> lane-dense intermediates
    x_t = x.transpose(0, 3, 1, 2).reshape(n, w_in, c_in * h_in)   # [N, 32, 96]

    consts = (m1, c1b, s1r, s1c, m2, c2b, s2r, s2c,
              g1, f1b, f2wT, f2b, f3wT, f3b)

    out = pl.pallas_call(
        _lenet_fused_kernel,
        out_shape=jax.ShapeDtypeStruct((n, 1, n_cls), jnp.float32),
        grid=(n,),
        in_specs=([pl.BlockSpec((1, w_in, c_in * h_in), lambda i: (i, 0, 0))]
                  + [_resident_spec(c.shape) for c in consts]),
        out_specs=pl.BlockSpec((1, 1, n_cls), lambda i: (i, 0, 0)),
        compiler_params=pltpu.CompilerParams(
            dimension_semantics=("parallel",)),
    )(x_t, *consts)
    return out.reshape(n, n_cls)                                  # [N, 10]


# ---------------------------------------------------------------------------
# Pure-JAX reference (for an in-script sanity check only)
# ---------------------------------------------------------------------------
def net_forward_reference(params, x):
    dn = ('NCHW', 'OIHW', 'NCHW')
    with jax.default_matmul_precision("float32"):
        y = jax.lax.conv_general_dilated(x, params["conv1_w"], (1, 1), 'VALID',
                                         dimension_numbers=dn)
        y = jax.nn.relu(y + params["conv1_b"][None, :, None, None])
        y = jax.lax.reduce_window(y, -jnp.inf, jax.lax.max,
                                  (1, 1, 2, 2), (1, 1, 2, 2), 'VALID')
        y = jax.lax.conv_general_dilated(y, params["conv2_w"], (1, 1), 'VALID',
                                         dimension_numbers=dn)
        y = jax.nn.relu(y + params["conv2_b"][None, :, None, None])
        y = jax.lax.reduce_window(y, -jnp.inf, jax.lax.max,
                                  (1, 1, 2, 2), (1, 1, 2, 2), 'VALID')
        y = y.reshape(y.shape[0], -1)
        y = jax.nn.relu(y @ params["fc1_w"].T + params["fc1_b"])
        y = jax.nn.relu(y @ params["fc2_w"].T + params["fc2_b"])
        y = y @ params["fc3_w"].T + params["fc3_b"]
    return y


if __name__ == "__main__":
    key = jax.random.PRNGKey(0)
    k_param, k_x = jax.random.split(key)
    params = init_params(k_param)
    # Spatial size must be 32 so that fc1's 16*5*5 input holds (as in CIFAR).
    x = jax.random.normal(k_x, (2, 3, 32, 32), jnp.float32)

    out = jax.block_until_ready(net_forward(params, x))
    assert out.shape == (2, 10), out.shape
    assert out.dtype == jnp.float32

    ref = jax.block_until_ready(net_forward_reference(params, x))
    np.testing.assert_allclose(np.asarray(out), np.asarray(ref),
                               rtol=2e-2, atol=2e-2)
    print("KERNEL_OK")
</pallas_src>

<mosaic_0001>
module attributes {stable_mosaic.version = 11 : i64} {
  func.func @_lenet_fused_kernel(%arg0: i32, %arg1: memref<1x32x96xf32, #tpu.memory_space<vmem>>, %arg2: memref<5x96x168xf32, #tpu.memory_space<vmem>>, %arg3: memref<1x168xf32, #tpu.memory_space<vmem>>, %arg4: memref<2x14x28xf32, #tpu.memory_space<vmem>>, %arg5: memref<2x168x84xf32, #tpu.memory_space<vmem>>, %arg6: memref<5x84x160xf32, #tpu.memory_space<vmem>>, %arg7: memref<1x160xf32, #tpu.memory_space<vmem>>, %arg8: memref<2x5x10xf32, #tpu.memory_space<vmem>>, %arg9: memref<2x160x80xf32, #tpu.memory_space<vmem>>, %arg10: memref<5x80x120xf32, #tpu.memory_space<vmem>>, %arg11: memref<1x120xf32, #tpu.memory_space<vmem>>, %arg12: memref<120x84xf32, #tpu.memory_space<vmem>>, %arg13: memref<1x84xf32, #tpu.memory_space<vmem>>, %arg14: memref<84x10xf32, #tpu.memory_space<vmem>>, %arg15: memref<1x10xf32, #tpu.memory_space<vmem>>, %arg16: memref<1x1x10xf32, #tpu.memory_space<vmem>>) attributes {dimension_semantics = [#tpu.dimension_semantics<parallel>], iteration_bounds = array<i64: 2>, scalar_prefetch = 0 : i64, scratch_operands = 0 : i64, tpu.core_type = #tpu.core_type<tc>, window_params = [{transform_indices = @transform_0, window_bounds = array<i64: 1, 32, 96>}, {pipeline_mode = #tpu.pipeline_mode<synchronous>, transform_indices = @transform_1, window_bounds = array<i64: 5, 96, 168>}, {pipeline_mode = #tpu.pipeline_mode<synchronous>, transform_indices = @transform_2, window_bounds = array<i64: 1, 168>}, {pipeline_mode = #tpu.pipeline_mode<synchronous>, transform_indices = @transform_3, window_bounds = array<i64: 2, 14, 28>}, {pipeline_mode = #tpu.pipeline_mode<synchronous>, transform_indices = @transform_4, window_bounds = array<i64: 2, 168, 84>}, {pipeline_mode = #tpu.pipeline_mode<synchronous>, transform_indices = @transform_5, window_bounds = array<i64: 5, 84, 160>}, {pipeline_mode = #tpu.pipeline_mode<synchronous>, transform_indices = @transform_6, window_bounds = array<i64: 1, 160>}, {pipeline_mode = #tpu.pipeline_mode<synchronous>, transform_indices = @transform_7, window_bounds = array<i64: 2, 5, 10>}, {pipeline_mode = #tpu.pipeline_mode<synchronous>, transform_indices = @transform_8, window_bounds = array<i64: 2, 160, 80>}, {pipeline_mode = #tpu.pipeline_mode<synchronous>, transform_indices = @transform_9, window_bounds = array<i64: 5, 80, 120>}, {pipeline_mode = #tpu.pipeline_mode<synchronous>, transform_indices = @transform_10, window_bounds = array<i64: 1, 120>}, {pipeline_mode = #tpu.pipeline_mode<synchronous>, transform_indices = @transform_11, window_bounds = array<i64: 120, 84>}, {pipeline_mode = #tpu.pipeline_mode<synchronous>, transform_indices = @transform_12, window_bounds = array<i64: 1, 84>}, {pipeline_mode = #tpu.pipeline_mode<synchronous>, transform_indices = @transform_13, window_bounds = array<i64: 84, 10>}, {pipeline_mode = #tpu.pipeline_mode<synchronous>, transform_indices = @transform_14, window_bounds = array<i64: 1, 10>}, {transform_indices = @transform_15, window_bounds = array<i64: 1, 1, 10>}]} {
    %c0 = arith.constant 0 : index
    %c0_0 = arith.constant 0 : index
    %c0_1 = arith.constant 0 : index
    %0 = vector.load %arg1[%c0, %c0_0, %c0_1] : memref<1x32x96xf32, #tpu.memory_space<vmem>>, vector<1x28x96xf32>
    %1 = vector.shape_cast %0 : vector<1x28x96xf32> to vector<28x96xf32>
    %c0_2 = arith.constant 0 : index
    %c0_3 = arith.constant 0 : index
    %c0_4 = arith.constant 0 : index
    %2 = vector.load %arg2[%c0_2, %c0_3, %c0_4] : memref<5x96x168xf32, #tpu.memory_space<vmem>>, vector<1x96x168xf32>
    %3 = vector.shape_cast %2 : vector<1x96x168xf32> to vector<96x168xf32>
    %cst = arith.constant dense<0.000000e+00> : vector<28x168xf32>
    %4 = tpu.matmul %1, %3, %cst {dimension_numbers = #tpu.dot_dimension_numbers<[1], [0], [0], [1], [0, 0, 1, 1], [], []>} : vector<28x96xf32>, vector<96x168xf32>, vector<28x168xf32> -> vector<28x168xf32>
    %c0_5 = arith.constant 0 : index
    %c1 = arith.constant 1 : index
    %c0_6 = arith.constant 0 : index
    %5 = vector.load %arg1[%c0_5, %c1, %c0_6] : memref<1x32x96xf32, #tpu.memory_space<vmem>>, vector<1x28x96xf32>
    %6 = vector.shape_cast %5 : vector<1x28x96xf32> to vector<28x96xf32>
    %c1_7 = arith.constant 1 : index
    %c0_8 = arith.constant 0 : index
    %c0_9 = arith.constant 0 : index
    %7 = vector.load %arg2[%c1_7, %c0_8, %c0_9] : memref<5x96x168xf32, #tpu.memory_space<vmem>>, vector<1x96x168xf32>
    %8 = vector.shape_cast %7 : vector<1x96x168xf32> to vector<96x168xf32>
    %cst_10 = arith.constant dense<0.000000e+00> : vector<28x168xf32>
    %9 = tpu.matmul %6, %8, %cst_10 {dimension_numbers = #tpu.dot_dimension_numbers<[1], [0], [0], [1], [0, 0, 1, 1], [], []>} : vector<28x96xf32>, vector<96x168xf32>, vector<28x168xf32> -> vector<28x168xf32>
    %10 = arith.addf %4, %9 : vector<28x168xf32>
    %c0_11 = arith.constant 0 : index
    %c2 = arith.constant 2 : index
    %c0_12 = arith.constant 0 : index
    %11 = vector.load %arg1[%c0_11, %c2, %c0_12] : memref<1x32x96xf32, #tpu.memory_space<vmem>>, vector<1x28x96xf32>
    %12 = vector.shape_cast %11 : vector<1x28x96xf32> to vector<28x96xf32>
    %c2_13 = arith.constant 2 : index
    %c0_14 = arith.constant 0 : index
    %c0_15 = arith.constant 0 : index
    %13 = vector.load %arg2[%c2_13, %c0_14, %c0_15] : memref<5x96x168xf32, #tpu.memory_space<vmem>>, vector<1x96x168xf32>
    %14 = vector.shape_cast %13 : vector<1x96x168xf32> to vector<96x168xf32>
    %cst_16 = arith.constant dense<0.000000e+00> : vector<28x168xf32>
    %15 = tpu.matmul %12, %14, %cst_16 {dimension_numbers = #tpu.dot_dimension_numbers<[1], [0], [0], [1], [0, 0, 1, 1], [], []>} : vector<28x96xf32>, vector<96x168xf32>, vector<28x168xf32> -> vector<28x168xf32>
    %16 = arith.addf %10, %15 : vector<28x168xf32>
    %c0_17 = arith.constant 0 : index
    %c3 = arith.constant 3 : index
    %c0_18 = arith.constant 0 : index
    %17 = vector.load %arg1[%c0_17, %c3, %c0_18] : memref<1x32x96xf32, #tpu.memory_space<vmem>>, vector<1x28x96xf32>
    %18 = vector.shape_cast %17 : vector<1x28x96xf32> to vector<28x96xf32>
    %c3_19 = arith.constant 3 : index
    %c0_20 = arith.constant 0 : index
    %c0_21 = arith.constant 0 : index
    %19 = vector.load %arg2[%c3_19, %c0_20, %c0_21] : memref<5x96x168xf32, #tpu.memory_space<vmem>>, vector<1x96x168xf32>
    %20 = vector.shape_cast %19 : vector<1x96x168xf32> to vector<96x168xf32>
    %cst_22 = arith.constant dense<0.000000e+00> : vector<28x168xf32>
    %21 = tpu.matmul %18, %20, %cst_22 {dimension_numbers = #tpu.dot_dimension_numbers<[1], [0], [0], [1], [0, 0, 1, 1], [], []>} : vector<28x96xf32>, vector<96x168xf32>, vector<28x168xf32> -> vector<28x168xf32>
    %22 = arith.addf %16, %21 : vector<28x168xf32>
    %c0_23 = arith.constant 0 : index
    %c4 = arith.constant 4 : index
    %c0_24 = arith.constant 0 : index
    %23 = vector.load %arg1[%c0_23, %c4, %c0_24] : memref<1x32x96xf32, #tpu.memory_space<vmem>>, vector<1x28x96xf32>
    %24 = vector.shape_cast %23 : vector<1x28x96xf32> to vector<28x96xf32>
    %c4_25 = arith.constant 4 : index
    %c0_26 = arith.constant 0 : index
    %c0_27 = arith.constant 0 : index
    %25 = vector.load %arg2[%c4_25, %c0_26, %c0_27] : memref<5x96x168xf32, #tpu.memory_space<vmem>>, vector<1x96x168xf32>
    %26 = vector.shape_cast %25 : vector<1x96x168xf32> to vector<96x168xf32>
    %cst_28 = arith.constant dense<0.000000e+00> : vector<28x168xf32>
    %27 = tpu.matmul %24, %26, %cst_28 {dimension_numbers = #tpu.dot_dimension_numbers<[1], [0], [0], [1], [0, 0, 1, 1], [], []>} : vector<28x96xf32>, vector<96x168xf32>, vector<28x168xf32> -> vector<28x168xf32>
    %28 = arith.addf %22, %27 : vector<28x168xf32>
    %c0_29 = arith.constant 0 : index
    %c0_30 = arith.constant 0 : index
    %29 = vector.load %arg3[%c0_29, %c0_30] : memref<1x168xf32, #tpu.memory_space<vmem>>, vector<1x168xf32>
    %30 = vector.broadcast %29 : vector<1x168xf32> to vector<28x168xf32>
    %31 = arith.addf %28, %30 : vector<28x168xf32>
    %cst_31 = arith.constant 0.000000e+00 : f32
    %32 = vector.broadcast %cst_31 : f32 to vector<28x168xf32>
    %33 = arith.maximumf %31, %32 : vector<28x168xf32>
    %c0_32 = arith.constant 0 : index
    %c0_33 = arith.constant 0 : index
    %c0_34 = arith.constant 0 : index
    %34 = vector.load %arg4[%c0_32, %c0_33, %c0_34] : memref<2x14x28xf32, #tpu.memory_space<vmem>>, vector<1x14x28xf32>
    %35 = vector.shape_cast %34 : vector<1x14x28xf32> to vector<14x28xf32>
    %cst_35 = arith.constant dense<0.000000e+00> : vector<14x168xf32>
    %36 = tpu.matmul %35, %33, %cst_35 {dimension_numbers = #tpu.dot_dimension_numbers<[1], [0], [0], [1], [0, 0, 1, 1], [], []>} : vector<14x28xf32>, vector<28x168xf32>, vector<14x168xf32> -> vector<14x168xf32>
    %c1_36 = arith.constant 1 : index
    %c0_37 = arith.constant 0 : index
    %c0_38 = arith.constant 0 : index
    %37 = vector.load %arg4[%c1_36, %c0_37, %c0_38] : memref<2x14x28xf32, #tpu.memory_space<vmem>>, vector<1x14x28xf32>
    %38 = vector.shape_cast %37 : vector<1x14x28xf32> to vector<14x28xf32>
    %cst_39 = arith.constant dense<0.000000e+00> : vector<14x168xf32>
    %39 = tpu.matmul %38, %33, %cst_39 {dimension_numbers = #tpu.dot_dimension_numbers<[1], [0], [0], [1], [0, 0, 1, 1], [], []>} : vector<14x28xf32>, vector<28x168xf32>, vector<14x168xf32> -> vector<14x168xf32>
    %40 = arith.maximumf %36, %39 : vector<14x168xf32>
    %c0_40 = arith.constant 0 : index
    %c0_41 = arith.constant 0 : index
    %c0_42 = arith.constant 0 : index
    %41 = vector.load %arg5[%c0_40, %c0_41, %c0_42] : memref<2x168x84xf32, #tpu.memory_space<vmem>>, vector<1x168x84xf32>
    %42 = vector.shape_cast %41 : vector<1x168x84xf32> to vector<168x84xf32>
    %cst_43 = arith.constant dense<0.000000e+00> : vector<14x84xf32>
    %43 = tpu.matmul %40, %42, %cst_43 {dimension_numbers = #tpu.dot_dimension_numbers<[1], [0], [0], [1], [0, 0, 1, 1], [], []>} : vector<14x168xf32>, vector<168x84xf32>, vector<14x84xf32> -> vector<14x84xf32>
    %c1_44 = arith.constant 1 : index
    %c0_45 = arith.constant 0 : index
    %c0_46 = arith.constant 0 : index
    %44 = vector.load %arg5[%c1_44, %c0_45, %c0_46] : memref<2x168x84xf32, #tpu.memory_space<vmem>>, vector<1x168x84xf32>
    %45 = vector.shape_cast %44 : vector<1x168x84xf32> to vector<168x84xf32>
    %cst_47 = arith.constant dense<0.000000e+00> : vector<14x84xf32>
    %46 = tpu.matmul %40, %45, %cst_47 {dimension_numbers = #tpu.dot_dimension_numbers<[1], [0], [0], [1], [0, 0, 1, 1], [], []>} : vector<14x168xf32>, vector<168x84xf32>, vector<14x84xf32> -> vector<14x84xf32>
    %47 = arith.maximumf %43, %46 : vector<14x84xf32>
    %48 = vector.extract_strided_slice %47 {offsets = [0, 0], sizes = [10, 84], strides = [1, 1]} : vector<14x84xf32> to vector<10x84xf32>
    %c0_48 = arith.constant 0 : index
    %c0_49 = arith.constant 0 : index
    %c0_50 = arith.constant 0 : index
    %49 = vector.load %arg6[%c0_48, %c0_49, %c0_50] : memref<5x84x160xf32, #tpu.memory_space<vmem>>, vector<1x84x160xf32>
    %50 = vector.shape_cast %49 : vector<1x84x160xf32> to vector<84x160xf32>
    %cst_51 = arith.constant dense<0.000000e+00> : vector<10x160xf32>
    %51 = tpu.matmul %48, %50, %cst_51 {dimension_numbers = #tpu.dot_dimension_numbers<[1], [0], [0], [1], [0, 0, 1, 1], [], []>} : vector<10x84xf32>, vector<84x160xf32>, vector<10x160xf32> -> vector<10x160xf32>
    %52 = vector.extract_strided_slice %47 {offsets = [1, 0], sizes = [10, 84], strides = [1, 1]} : vector<14x84xf32> to vector<10x84xf32>
    %c1_52 = arith.constant 1 : index
    %c0_53 = arith.constant 0 : index
    %c0_54 = arith.constant 0 : index
    %53 = vector.load %arg6[%c1_52, %c0_53, %c0_54] : memref<5x84x160xf32, #tpu.memory_space<vmem>>, vector<1x84x160xf32>
    %54 = vector.shape_cast %53 : vector<1x84x160xf32> to vector<84x160xf32>
    %cst_55 = arith.constant dense<0.000000e+00> : vector<10x160xf32>
    %55 = tpu.matmul %52, %54, %cst_55 {dimension_numbers = #tpu.dot_dimension_numbers<[1], [0], [0], [1], [0, 0, 1, 1], [], []>} : vector<10x84xf32>, vector<84x160xf32>, vector<10x160xf32> -> vector<10x160xf32>
    %56 = arith.addf %51, %55 : vector<10x160xf32>
    %57 = vector.extract_strided_slice %47 {offsets = [2, 0], sizes = [10, 84], strides = [1, 1]} : vector<14x84xf32> to vector<10x84xf32>
    %c2_56 = arith.constant 2 : index
    %c0_57 = arith.constant 0 : index
    %c0_58 = arith.constant 0 : index
    %58 = vector.load %arg6[%c2_56, %c0_57, %c0_58] : memref<5x84x160xf32, #tpu.memory_space<vmem>>, vector<1x84x160xf32>
    %59 = vector.shape_cast %58 : vector<1x84x160xf32> to vector<84x160xf32>
    %cst_59 = arith.constant dense<0.000000e+00> : vector<10x160xf32>
    %60 = tpu.matmul %57, %59, %cst_59 {dimension_numbers = #tpu.dot_dimension_numbers<[1], [0], [0], [1], [0, 0, 1, 1], [], []>} : vector<10x84xf32>, vector<84x160xf32>, vector<10x160xf32> -> vector<10x160xf32>
    %61 = arith.addf %56, %60 : vector<10x160xf32>
    %62 = vector.extract_strided_slice %47 {offsets = [3, 0], sizes = [10, 84], strides = [1, 1]} : vector<14x84xf32> to vector<10x84xf32>
    %c3_60 = arith.constant 3 : index
    %c0_61 = arith.constant 0 : index
    %c0_62 = arith.constant 0 : index
    %63 = vector.load %arg6[%c3_60, %c0_61, %c0_62] : memref<5x84x160xf32, #tpu.memory_space<vmem>>, vector<1x84x160xf32>
    %64 = vector.shape_cast %63 : vector<1x84x160xf32> to vector<84x160xf32>
    %cst_63 = arith.constant dense<0.000000e+00> : vector<10x160xf32>
    %65 = tpu.matmul %62, %64, %cst_63 {dimension_numbers = #tpu.dot_dimension_numbers<[1], [0], [0], [1], [0, 0, 1, 1], [], []>} : vector<10x84xf32>, vector<84x160xf32>, vector<10x160xf32> -> vector<10x160xf32>
    %66 = arith.addf %61, %65 : vector<10x160xf32>
    %67 = vector.extract_strided_slice %47 {offsets = [4, 0], sizes = [10, 84], strides = [1, 1]} : vector<14x84xf32> to vector<10x84xf32>
    %c4_64 = arith.constant 4 : index
    %c0_65 = arith.constant 0 : index
    %c0_66 = arith.constant 0 : index
    %68 = vector.load %arg6[%c4_64, %c0_65, %c0_66] : memref<5x84x160xf32, #tpu.memory_space<vmem>>, vector<1x84x160xf32>
    %69 = vector.shape_cast %68 : vector<1x84x160xf32> to vector<84x160xf32>
    %cst_67 = arith.constant dense<0.000000e+00> : vector<10x160xf32>
    %70 = tpu.matmul %67, %69, %cst_67 {dimension_numbers = #tpu.dot_dimension_numbers<[1], [0], [0], [1], [0, 0, 1, 1], [], []>} : vector<10x84xf32>, vector<84x160xf32>, vector<10x160xf32> -> vector<10x160xf32>
    %71 = arith.addf %66, %70 : vector<10x160xf32>
    %c0_68 = arith.constant 0 : index
    %c0_69 = arith.constant 0 : index
    %72 = vector.load %arg7[%c0_68, %c0_69] : memref<1x160xf32, #tpu.memory_space<vmem>>, vector<1x160xf32>
    %73 = vector.broadcast %72 : vector<1x160xf32> to vector<10x160xf32>
    %74 = arith.addf %71, %73 : vector<10x160xf32>
    %cst_70 = arith.constant 0.000000e+00 : f32
    %75 = vector.broadcast %cst_70 : f32 to vector<10x160xf32>
    %76 = arith.maximumf %74, %75 : vector<10x160xf32>
    %c0_71 = arith.constant 0 : index
    %c0_72 = arith.constant 0 : index
    %c0_73 = arith.constant 0 : index
    %77 = vector.load %arg8[%c0_71, %c0_72, %c0_73] : memref<2x5x10xf32, #tpu.memory_space<vmem>>, vector<1x5x10xf32>
    %78 = vector.shape_cast %77 : vector<1x5x10xf32> to vector<5x10xf32>
    %cst_74 = arith.constant dense<0.000000e+00> : vector<5x160xf32>
    %79 = tpu.matmul %78, %76, %cst_74 {dimension_numbers = #tpu.dot_dimension_numbers<[1], [0], [0], [1], [0, 0, 1, 1], [], []>} : vector<5x10xf32>, vector<10x160xf32>, vector<5x160xf32> -> vector<5x160xf32>
    %c1_75 = arith.constant 1 : index
    %c0_76 = arith.constant 0 : index
    %c0_77 = arith.constant 0 : index
    %80 = vector.load %arg8[%c1_75, %c0_76, %c0_77] : memref<2x5x10xf32, #tpu.memory_space<vmem>>, vector<1x5x10xf32>
    %81 = vector.shape_cast %80 : vector<1x5x10xf32> to vector<5x10xf32>
    %cst_78 = arith.constant dense<0.000000e+00> : vector<5x160xf32>
    %82 = tpu.matmul %81, %76, %cst_78 {dimension_numbers = #tpu.dot_dimension_numbers<[1], [0], [0], [1], [0, 0, 1, 1], [], []>} : vector<5x10xf32>, vector<10x160xf32>, vector<5x160xf32> -> vector<5x160xf32>
    %83 = arith.maximumf %79, %82 : vector<5x160xf32>
    %c0_79 = arith.constant 0 : index
    %c0_80 = arith.constant 0 : index
    %c0_81 = arith.constant 0 : index
    %84 = vector.load %arg9[%c0_79, %c0_80, %c0_81] : memref<2x160x80xf32, #tpu.memory_space<vmem>>, vector<1x160x80xf32>
    %85 = vector.shape_cast %84 : vector<1x160x80xf32> to vector<160x80xf32>
    %cst_82 = arith.constant dense<0.000000e+00> : vector<5x80xf32>
    %86 = tpu.matmul %83, %85, %cst_82 {dimension_numbers = #tpu.dot_dimension_numbers<[1], [0], [0], [1], [0, 0, 1, 1], [], []>} : vector<5x160xf32>, vector<160x80xf32>, vector<5x80xf32> -> vector<5x80xf32>
    %c1_83 = arith.constant 1 : index
    %c0_84 = arith.constant 0 : index
    %c0_85 = arith.constant 0 : index
    %87 = vector.load %arg9[%c1_83, %c0_84, %c0_85] : memref<2x160x80xf32, #tpu.memory_space<vmem>>, vector<1x160x80xf32>
    %88 = vector.shape_cast %87 : vector<1x160x80xf32> to vector<160x80xf32>
    %cst_86 = arith.constant dense<0.000000e+00> : vector<5x80xf32>
    %89 = tpu.matmul %83, %88, %cst_86 {dimension_numbers = #tpu.dot_dimension_numbers<[1], [0], [0], [1], [0, 0, 1, 1], [], []>} : vector<5x160xf32>, vector<160x80xf32>, vector<5x80xf32> -> vector<5x80xf32>
    %90 = arith.maximumf %86, %89 : vector<5x80xf32>
    %91 = vector.extract_strided_slice %90 {offsets = [0, 0], sizes = [1, 80], strides = [1, 1]} : vector<5x80xf32> to vector<1x80xf32>
    %c0_87 = arith.constant 0 : index
    %c0_88 = arith.constant 0 : index
    %c0_89 = arith.constant 0 : index
    %92 = vector.load %arg10[%c0_87, %c0_88, %c0_89] : memref<5x80x120xf32, #tpu.memory_space<vmem>>, vector<1x80x120xf32>
    %93 = vector.shape_cast %92 : vector<1x80x120xf32> to vector<80x120xf32>
    %cst_90 = arith.constant dense<0.000000e+00> : vector<1x120xf32>
    %94 = tpu.matmul %91, %93, %cst_90 {dimension_numbers = #tpu.dot_dimension_numbers<[1], [0], [0], [1], [0, 0, 1, 1], [], []>} : vector<1x80xf32>, vector<80x120xf32>, vector<1x120xf32> -> vector<1x120xf32>
    %95 = vector.extract_strided_slice %90 {offsets = [1, 0], sizes = [1, 80], strides = [1, 1]} : vector<5x80xf32> to vector<1x80xf32>
    %c1_91 = arith.constant 1 : index
    %c0_92 = arith.constant 0 : index
    %c0_93 = arith.constant 0 : index
    %96 = vector.load %arg10[%c1_91, %c0_92, %c0_93] : memref<5x80x120xf32, #tpu.memory_space<vmem>>, vector<1x80x120xf32>
    %97 = vector.shape_cast %96 : vector<1x80x120xf32> to vector<80x120xf32>
    %cst_94 = arith.constant dense<0.000000e+00> : vector<1x120xf32>
    %98 = tpu.matmul %95, %97, %cst_94 {dimension_numbers = #tpu.dot_dimension_numbers<[1], [0], [0], [1], [0, 0, 1, 1], [], []>} : vector<1x80xf32>, vector<80x120xf32>, vector<1x120xf32> -> vector<1x120xf32>
    %99 = arith.addf %94, %98 : vector<1x120xf32>
    %100 = vector.extract_strided_slice %90 {offsets = [2, 0], sizes = [1, 80], strides = [1, 1]} : vector<5x80xf32> to vector<1x80xf32>
    %c2_95 = arith.constant 2 : index
    %c0_96 = arith.constant 0 : index
    %c0_97 = arith.constant 0 : index
    %101 = vector.load %arg10[%c2_95, %c0_96, %c0_97] : memref<5x80x120xf32, #tpu.memory_space<vmem>>, vector<1x80x120xf32>
    %102 = vector.shape_cast %101 : vector<1x80x120xf32> to vector<80x120xf32>
    %cst_98 = arith.constant dense<0.000000e+00> : vector<1x120xf32>
    %103 = tpu.matmul %100, %102, %cst_98 {dimension_numbers = #tpu.dot_dimension_numbers<[1], [0], [0], [1], [0, 0, 1, 1], [], []>} : vector<1x80xf32>, vector<80x120xf32>, vector<1x120xf32> -> vector<1x120xf32>
    %104 = arith.addf %99, %103 : vector<1x120xf32>
    %105 = vector.extract_strided_slice %90 {offsets = [3, 0], sizes = [1, 80], strides = [1, 1]} : vector<5x80xf32> to vector<1x80xf32>
    %c3_99 = arith.constant 3 : index
    %c0_100 = arith.constant 0 : index
    %c0_101 = arith.constant 0 : index
    %106 = vector.load %arg10[%c3_99, %c0_100, %c0_101] : memref<5x80x120xf32, #tpu.memory_space<vmem>>, vector<1x80x120xf32>
    %107 = vector.shape_cast %106 : vector<1x80x120xf32> to vector<80x120xf32>
    %cst_102 = arith.constant dense<0.000000e+00> : vector<1x120xf32>
    %108 = tpu.matmul %105, %107, %cst_102 {dimension_numbers = #tpu.dot_dimension_numbers<[1], [0], [0], [1], [0, 0, 1, 1], [], []>} : vector<1x80xf32>, vector<80x120xf32>, vector<1x120xf32> -> vector<1x120xf32>
    %109 = arith.addf %104, %108 : vector<1x120xf32>
    %110 = vector.extract_strided_slice %90 {offsets = [4, 0], sizes = [1, 80], strides = [1, 1]} : vector<5x80xf32> to vector<1x80xf32>
    %c4_103 = arith.constant 4 : index
    %c0_104 = arith.constant 0 : index
    %c0_105 = arith.constant 0 : index
    %111 = vector.load %arg10[%c4_103, %c0_104, %c0_105] : memref<5x80x120xf32, #tpu.memory_space<vmem>>, vector<1x80x120xf32>
    %112 = vector.shape_cast %111 : vector<1x80x120xf32> to vector<80x120xf32>
    %cst_106 = arith.constant dense<0.000000e+00> : vector<1x120xf32>
    %113 = tpu.matmul %110, %112, %cst_106 {dimension_numbers = #tpu.dot_dimension_numbers<[1], [0], [0], [1], [0, 0, 1, 1], [], []>} : vector<1x80xf32>, vector<80x120xf32>, vector<1x120xf32> -> vector<1x120xf32>
    %114 = arith.addf %109, %113 : vector<1x120xf32>
    %c0_107 = arith.constant 0 : index
    %c0_108 = arith.constant 0 : index
    %115 = vector.load %arg11[%c0_107, %c0_108] : memref<1x120xf32, #tpu.memory_space<vmem>>, vector<1x120xf32>
    %116 = arith.addf %114, %115 : vector<1x120xf32>
    %cst_109 = arith.constant 0.000000e+00 : f32
    %117 = vector.broadcast %cst_109 : f32 to vector<1x120xf32>
    %118 = arith.maximumf %116, %117 : vector<1x120xf32>
    %c0_110 = arith.constant 0 : index
    %c0_111 = arith.constant 0 : index
    %119 = vector.load %arg12[%c0_110, %c0_111] : memref<120x84xf32, #tpu.memory_space<vmem>>, vector<120x84xf32>
    %cst_112 = arith.constant dense<0.000000e+00> : vector<1x84xf32>
    %120 = tpu.matmul %118, %119, %cst_112 {dimension_numbers = #tpu.dot_dimension_numbers<[1], [0], [0], [1], [0, 0, 1, 1], [], []>} : vector<1x120xf32>, vector<120x84xf32>, vector<1x84xf32> -> vector<1x84xf32>
    %c0_113 = arith.constant 0 : index
    %c0_114 = arith.constant 0 : index
    %121 = vector.load %arg13[%c0_113, %c0_114] : memref<1x84xf32, #tpu.memory_space<vmem>>, vector<1x84xf32>
    %122 = arith.addf %120, %121 : vector<1x84xf32>
    %cst_115 = arith.constant 0.000000e+00 : f32
    %123 = vector.broadcast %cst_115 : f32 to vector<1x84xf32>
    %124 = arith.maximumf %122, %123 : vector<1x84xf32>
    %c0_116 = arith.constant 0 : index
    %c0_117 = arith.constant 0 : index
    %125 = vector.load %arg14[%c0_116, %c0_117] : memref<84x10xf32, #tpu.memory_space<vmem>>, vector<84x10xf32>
    %cst_118 = arith.constant dense<0.000000e+00> : vector<1x10xf32>
    %126 = tpu.matmul %124, %125, %cst_118 {dimension_numbers = #tpu.dot_dimension_numbers<[1], [0], [0], [1], [0, 0, 1, 1], [], []>} : vector<1x84xf32>, vector<84x10xf32>, vector<1x10xf32> -> vector<1x10xf32>
    %c0_119 = arith.constant 0 : index
    %c0_120 = arith.constant 0 : index
    %127 = vector.load %arg15[%c0_119, %c0_120] : memref<1x10xf32, #tpu.memory_space<vmem>>, vector<1x10xf32>
    %128 = arith.addf %126, %127 : vector<1x10xf32>
    %c0_121 = arith.constant 0 : index
    %c0_122 = arith.constant 0 : index
    %c0_123 = arith.constant 0 : index
    %129 = vector.load %arg16[%c0_121, %c0_122, %c0_123] : memref<1x1x10xf32, #tpu.memory_space<vmem>>, vector<1x1x10xf32>
    %130 = vector.shape_cast %129 : vector<1x1x10xf32> to vector<1x10xf32>
    %131 = vector.shape_cast %128 : vector<1x10xf32> to vector<1x1x10xf32>
    tpu.vector_store %arg16[%c0_121, %c0_122, %c0_123], %131 {strides = array<i32>} : memref<1x1x10xf32, #tpu.memory_space<vmem>>, vector<1x1x10xf32>,
    return
  }
  func.func @transform_0(%arg0: i32) -> (i32, i32, i32) {
    %c0_i32 = arith.constant 0 : i32
    %c0_i32_0 = arith.constant 0 : i32
    %c0_i32_1 = arith.constant 0 : i32
    return %arg0, %c0_i32, %c0_i32_0 : i32, i32, i32
  }
  func.func @transform_1(%arg0: i32) -> (i32, i32, i32) {
    %c0_i32 = arith.constant 0 : i32
    %c0_i32_0 = arith.constant 0 : i32
    %c0_i32_1 = arith.constant 0 : i32
    %c0_i32_2 = arith.constant 0 : i32
    return %c0_i32, %c0_i32_0, %c0_i32_1 : i32, i32, i32
  }
  func.func @transform_2(%arg0: i32) -> (i32, i32) {
    %c0_i32 = arith.constant 0 : i32
    %c0_i32_0 = arith.constant 0 : i32
    %c0_i32_1 = arith.constant 0 : i32
    return %c0_i32, %c0_i32_0 : i32, i32
  }
  func.func @transform_3(%arg0: i32) -> (i32, i32, i32) {
    %c0_i32 = arith.constant 0 : i32
    %c0_i32_0 = arith.constant 0 : i32
    %c0_i32_1 = arith.constant 0 : i32
    %c0_i32_2 = arith.constant 0 : i32
    return %c0_i32, %c0_i32_0, %c0_i32_1 : i32, i32, i32
  }
  func.func @transform_4(%arg0: i32) -> (i32, i32, i32) {
    %c0_i32 = arith.constant 0 : i32
    %c0_i32_0 = arith.constant 0 : i32
    %c0_i32_1 = arith.constant 0 : i32
    %c0_i32_2 = arith.constant 0 : i32
    return %c0_i32, %c0_i32_0, %c0_i32_1 : i32, i32, i32
  }
  func.func @transform_5(%arg0: i32) -> (i32, i32, i32) {
    %c0_i32 = arith.constant 0 : i32
    %c0_i32_0 = arith.constant 0 : i32
    %c0_i32_1 = arith.constant 0 : i32
    %c0_i32_2 = arith.constant 0 : i32
    return %c0_i32, %c0_i32_0, %c0_i32_1 : i32, i32, i32
  }
  func.func @transform_6(%arg0: i32) -> (i32, i32) {
    %c0_i32 = arith.constant 0 : i32
    %c0_i32_0 = arith.constant 0 : i32
    %c0_i32_1 = arith.constant 0 : i32
    return %c0_i32, %c0_i32_0 : i32, i32
  }
  func.func @transform_7(%arg0: i32) -> (i32, i32, i32) {
    %c0_i32 = arith.constant 0 : i32
    %c0_i32_0 = arith.constant 0 : i32
    %c0_i32_1 = arith.constant 0 : i32
    %c0_i32_2 = arith.constant 0 : i32
    return %c0_i32, %c0_i32_0, %c0_i32_1 : i32, i32, i32
  }
  func.func @transform_8(%arg0: i32) -> (i32, i32, i32) {
    %c0_i32 = arith.constant 0 : i32
    %c0_i32_0 = arith.constant 0 : i32
    %c0_i32_1 = arith.constant 0 : i32
    %c0_i32_2 = arith.constant 0 : i32
    return %c0_i32, %c0_i32_0, %c0_i32_1 : i32, i32, i32
  }
  func.func @transform_9(%arg0: i32) -> (i32, i32, i32) {
    %c0_i32 = arith.constant 0 : i32
    %c0_i32_0 = arith.constant 0 : i32
    %c0_i32_1 = arith.constant 0 : i32
    %c0_i32_2 = arith.constant 0 : i32
    return %c0_i32, %c0_i32_0, %c0_i32_1 : i32, i32, i32
  }
  func.func @transform_10(%arg0: i32) -> (i32, i32) {
    %c0_i32 = arith.constant 0 : i32
    %c0_i32_0 = arith.constant 0 : i32
    %c0_i32_1 = arith.constant 0 : i32
    return %c0_i32, %c0_i32_0 : i32, i32
  }
  func.func @transform_11(%arg0: i32) -> (i32, i32) {
    %c0_i32 = arith.constant 0 : i32
    %c0_i32_0 = arith.constant 0 : i32
    %c0_i32_1 = arith.constant 0 : i32
    return %c0_i32, %c0_i32_0 : i32, i32
  }
  func.func @transform_12(%arg0: i32) -> (i32, i32) {
    %c0_i32 = arith.constant 0 : i32
    %c0_i32_0 = arith.constant 0 : i32
    %c0_i32_1 = arith.constant 0 : i32
    return %c0_i32, %c0_i32_0 : i32, i32
  }
  func.func @transform_13(%arg0: i32) -> (i32, i32) {
    %c0_i32 = arith.constant 0 : i32
    %c0_i32_0 = arith.constant 0 : i32
    %c0_i32_1 = arith.constant 0 : i32
    return %c0_i32, %c0_i32_0 : i32, i32
  }
  func.func @transform_14(%arg0: i32) -> (i32, i32) {
    %c0_i32 = arith.constant 0 : i32
    %c0_i32_0 = arith.constant 0 : i32
    %c0_i32_1 = arith.constant 0 : i32
    return %c0_i32, %c0_i32_0 : i32, i32
  }
  func.func @transform_15(%arg0: i32) -> (i32, i32, i32) {
    %c0_i32 = arith.constant 0 : i32
    %c0_i32_0 = arith.constant 0 : i32
    %c0_i32_1 = arith.constant 0 : i32
    return %arg0, %c0_i32, %c0_i32_0 : i32, i32, i32
  }
}

</mosaic_0001>

<bundles_post_ra>
// kernel: net_forward.1
= control target key start
LH: loop header
LB: loop body
LE: loop exit
PB: predicated region body
PF: predicated region fallthrough
CT: control target
= control target key end

     0   :  { %20 = vsyncpa [#allocation3], 0  ;;  %s6091_s0 = inlined_call_operand.vmem [shape: f32[2,32,96], index: 0, kind: input, shape index: {}]   ;;  %s6092_s1 = inlined_call_operand.vmem [shape: f32[5,96,168], index: 1, kind: input, shape index: {}]   ;;  %s6093_s2 = inlined_call_operand.vmem [shape: f32[1,168], index: 2, kind: input, shape index: {}]   ;;  %s6094_s3 = inlined_call_operand.vmem [shape: f32[2,14,28], index: 3, kind: input, shape index: {}]   ;;  %s6095_s4 = inlined_call_operand.vmem [shape: f32[2,168,84], index: 4, kind: input, shape index: {}]   ;;  %s6096_s5 = inlined_call_operand.vmem [shape: f32[5,84,160], index: 5, kind: input, shape index: {}]   ;;  %s6097_s6 = inlined_call_operand.vmem [shape: f32[1,160], index: 6, kind: input, shape index: {}]   ;;  %s6098_s7 = inlined_call_operand.vmem [shape: f32[2,5,10], index: 7, kind: input, shape index: {}]   ;;  %s6099_s8 = inlined_call_operand.vmem [shape: f32[2,160,80], index: 8, kind: input, shape index: {}]   ;;  %s6100_s9 = inlined_call_operand.vmem [shape: f32[5,80,120], index: 9, kind: input, shape index: {}]   ;;  %s6101_s10 = inlined_call_operand.vmem [shape: f32[1,120], index: 10, kind: input, shape index: {}]   ;;  %s6102_s11 = inlined_call_operand.vmem [shape: f32[120,84], index: 11, kind: input, shape index: {}]   ;;  %s6103_s12 = inlined_call_operand.vmem [shape: f32[1,84], index: 12, kind: input, shape index: {}]   ;;  %s6104_s13 = inlined_call_operand.vmem [shape: f32[84,10], index: 13, kind: input, shape index: {}]   ;;  %s6105_s14 = inlined_call_operand.vmem [shape: f32[1,10], index: 14, kind: input, shape index: {}]   ;;  %s6106_s15 = inlined_call_operand.hbm [shape: f32[2,1,10], index: 15, kind: output, shape index: {}]  }
   0x1   :  { %22 = vsyncpa [#allocation3 + $0x1], 0  ;;  %s4525_s18 = smov 0   ;;  %s4527_s19 = smov 0  }
   0x2   :  { %s4529_s20 = smov 0   ;;  %s4531_s21 = smov 0  }
   0x3 LB: > { %6113 = sst [smem:[#allocation5_spill]] %s4426_s18  ;;  %s4546_s22 = sadd.s32 4294967295, %s4438_s21   ;;  %s4438_s21 = sphi %s4531_s21, %s6124_s21   ;;  %s4434_s20 = sphi %s4529_s20, %s6126_s20   ;;  %s4430_s19 = sphi %s4527_s19, %s6128_s19   ;;  %s4426_s18 = sphi %s4525_s18, %s6127_s18  }
   0x4   : > { %6114 = sst [smem:[#allocation6_spill]] %s4434_s20  ;;  %s3200_s23 = sadd.s32 4294967294, %s4438_s21  }
   0x5   : > { %6115 = sst [smem:[#allocation7_spill]] %s4438_s21  ;;  %s4550_s24 = sadd.s32 1, %s4438_s21  }
   0x6   : > { %6116 = sst [smem:[#allocation8_spill]] %s4550_s24  ;;  %s355_s25 = sadd.s32 1, %s4434_s20 }
   0x7   : > { %s352_s26 = ssub.s32 %s4438_s21, %s4550_s24  ;;  %p365_p0 = scmp.ne.s32.totalorder %s4434_s20, %s4430_s19 }
   0x8   : > { %p353_p1 = scmp.eq.s32.totalorder %s352_s26, 0  ;;  %p366_p2 = scmp.eq.s32.totalorder %s4546_s22, 1 }
   0x9   : > { %p371_p3 = scmp.ne.s32.totalorder %s4430_s19, %s4426_s18  ;;  %p372_p4 = scmp.eq.s32.totalorder %s3200_s23, 1 }
   0xa   : > { %s4561_s27 = scalar_select %p353_p1, %s4434_s20, %s355_s25  }
   0xb   : > { %p4563_p5 = por %p366_p2, %p365_p0  ;;  %p4567_p6 = por %p372_p4, %p371_p3 }
   0xc   : > { %6117 = sst [smem:[#allocation9_spill]] %s4561_s27  ;;  %p3203_p7 = scmp.ge.s32.totalorder %s4438_s21, 1 }
   0xd   : > { %s6119_s29 = scalar_select %p4567_p6, 1, 0 }
   0xe   : > { %p440_p8 = scmp.lt.s32.totalorder %s4438_s21, 3 }
   0xf   : > { %6120 = sst [smem:[#allocation10_spill]] %s6119_s29 }
  0x10   : > { %p441_p9 = pnand %p3203_p7, %p440_p8 }
  0x11   : > { %v3207_v0 = vld [vmem:[%s6092_s1 + $0xc8] sm:$0xff] (!%p441_p9)  ;;  %v3209_v1 = vld [vmem:[%s6092_s1 + $0xd8] sm:$0xff] (!%p441_p9)  ;;  %v3206_v2 = vld [vmem:[%s6092_s1 + $0xc0] sm:$0xff] (!%p441_p9)  ;;  %v4440_v7 = vmov (!%p441_p9), 0.0   ;;  %p487_p10 = scmp.lt.s32.totalorder (!%p441_p9), %s4546_s22, 1  ;;  %vm549_vm0 = vcmask (!%p441_p9), 785408  }
  0x12   : > { %444 = sbr.rel (%p441_p9) target bundleno = 2355 (0x933), region = 80  ;;  %v3802_v3 = vpack.c.bf16 (!%p441_p9), %v3209_v1, %v3207_v0  ;;  %v3208_v4 = vld [vmem:[%s6092_s1 + $0xd0] sm:$0xff] (!%p441_p9)  ;;  %v3211_v5 = vld [vmem:[%s6092_s1 + $0xe8] sm:$0xff] (!%p441_p9)  ;;  %v3213_v6 = vld [vmem:[%s6092_s1 + $0xf8] sm:$0xff] (!%p441_p9)  ;;  %626 = vmatprep.mubr.f32.mxu0 (!%p441_p9), %v4440_v7  ;;  %1274 = vmatprep.mubr.f32.mxu1 (!%p441_p9), %v4440_v7  ;;  %vm1203_vm1 = vcmask (!%p441_p9), 1043456   ;;  %vm4441_vm2 = vmmov (!%p441_p9), 1  }
  0x13   : > { %v3804_v8 = vpack.c.bf16 (!%p441_p9), %v3208_v4, %v3206_v2  ;;  %v3806_v9 = vpack.c.bf16 (!%p441_p9), %v3213_v6, %v3211_v5  ;;  %v3210_v10 = vld [vmem:[%s6092_s1 + $0xe0] sm:$0xff] (!%p441_p9)  ;;  %v3212_v11 = vld [vmem:[%s6092_s1 + $0xf0] sm:$0xff] (!%p441_p9)  ;;  %v3215_v12 = vld [vmem:[%s6092_s1 + $0x108] sm:$0xff] (!%p441_p9)  ;;  %vm1196_vm4 = vcmask (!%p441_p9), 228352   ;;  %vm1398_vm5 = vcmask (!%p441_p9), 326656   ;;  %s485_s29 = sand.u32 (!%p441_p9), 1, %s4430_s19  }
  0x14   : > { %3803 = vmatprep.subr.bf16.mxu0 (!%p441_p9), %v3802_v3  ;;  %v3217_v13 = vld [vmem:[%s6092_s1 + $0x118] sm:$0xff] (!%p441_p9)  ;;  %v3808_v14 = vpack.c.bf16 (!%p441_p9), %v3212_v11, %v3210_v10  ;;  %v3214_v16 = vld [vmem:[%s6092_s1 + $0x100] sm:$0xff] (!%p441_p9)  ;;  %v3216_v17 = vld [vmem:[%s6092_s1 + $0x110] sm:$0xff] (!%p441_p9)  ;;  %vm1626_vm6 = vcmask (!%p441_p9), 1046528   ;;  %vm1630_vm7 = vcmask (!%p441_p9), 687104   ;;  %vm1828_vm8 = vcmask (!%p441_p9), 1045504  }
  0x15   : > { %3805 = vmatpush1.bf16.msra.mxu0 (!%p441_p9), %v3804_v8  ;;  %v3810_v15 = vpack.c.bf16 (!%p441_p9), %v3217_v13, %v3215_v12  ;;  %v3219_v18 = vld [vmem:[%s6092_s1 + $0x128] sm:$0xff] (!%p441_p9)  ;;  %v3221_v19 = vld [vmem:[%s6092_s1 + $0x138] sm:$0xff] (!%p441_p9)  ;;  %v3812_v20 = vpack.c.bf16 (!%p441_p9), %v3216_v17, %v3214_v16  ;;  %v3218_v22 = vld [vmem:[%s6092_s1 + $0x120] sm:$0xff] (!%p441_p9)  ;;  %vm1946_vm9 = vcmask (!%p441_p9), 1044480   ;;  %vm2183_vm10 = vcmask (!%p441_p9), 1041408   ;;  %s3542_s23 = sshll.u32 (!%p441_p9), %s4546_s22, 4 }
  0x16   : > { %3807 = vmatprep.subr.bf16.mxu0 (!%p441_p9), %v3806_v9  ;;  %v3814_v21 = vpack.c.bf16 (!%p441_p9), %v3221_v19, %v3219_v18  ;;  %v3220_v23 = vld [vmem:[%s6092_s1 + $0x130] sm:$0xff] (!%p441_p9)  ;;  %v3223_v24 = vld [vmem:[%s6092_s1 + $0x148] sm:$0xff] (!%p441_p9)  ;;  %v3225_v25 = vld [vmem:[%s6092_s1 + $0x158] sm:$0xff] (!%p441_p9)  ;;  %vm2179_vm12 = vcmask (!%p441_p9), 80896   ;;  %vm2359_vm13 = vcmask (!%p441_p9), 261120   ;;  %vm4443_vm14 = vmmov (!%p441_p9), 0   ;;  %s6049_s27 = scalar_lea.hbm (!%p441_p9), %s6106_s15, %s3542_s23 }
  0x17   : > { %v3816_v26 = vpack.c.bf16 (!%p441_p9), %v3220_v23, %v3218_v22  ;;  %v3818_v27 = vpack.c.bf16 (!%p441_p9), %v3225_v25, %v3223_v24  ;;  %v3222_v28 = vld [vmem:[%s6092_s1 + $0x140] sm:$0xff] (!%p441_p9)  ;;  %v3224_v29 = vld [vmem:[%s6092_s1 + $0x150] sm:$0xff] (!%p441_p9)  ;;  %v3227_v30 = vld [vmem:[%s6092_s1 + $0x168] sm:$0xff] (!%p441_p9)  ;;  %vm2548_vm15 = vcmask (!%p441_p9), 654336   ;;  %s3133_s24 = scalar_lea.sflag (!%p441_p9), [#allocation3], %s485_s29 }
  0x18   : > { %v3229_v31 = vld [vmem:[%s6092_s1 + $0x178] sm:$0xff] (!%p441_p9)  ;;  %v3820_v32 = vpack.c.bf16 (!%p441_p9), %v3224_v29, %v3222_v28  ;;  %v3226_v34 = vld [vmem:[%s6092_s1 + $0x160] sm:$0xff] (!%p441_p9)  ;;  %v3228_v35 = vld [vmem:[%s6092_s1 + $0x170] sm:$0xff] (!%p441_p9) }
  0x19   : > { %3809 = vmatpush1.bf16.msra.mxu0 %v3808_v14  ;;  %s488_s30 = scalar_select %p487_p10, %s4546_s22, 1  ;;  %v3822_v33 = vpack.c.bf16 %v3229_v31, %v3227_v30  ;;  %v497_v36 = vld [vmem:[%s6092_s1 + $0x8] sm:$0xff]  ;;  %v499_v37 = vld [vmem:[%s6092_s1 + $0x18] sm:$0xff]  ;;  %v3824_v38 = vpack.c.bf16 %v3228_v35, %v3226_v34  ;;  %v496_v40 = vld [vmem:[%s6092_s1] sm:$0xff] }
  0x1a   : > { %3811 = vmatprep.subr.bf16.mxu0 %v3810_v15  ;;  %v3826_v39 = vpack.c.bf16 %v499_v37, %v497_v36  ;;  %v498_v41 = vld [vmem:[%s6092_s1 + $0x10] sm:$0xff]  ;;  %v501_v42 = vld [vmem:[%s6092_s1 + $0x28] sm:$0xff]  ;;  %v503_v43 = vld [vmem:[%s6092_s1 + $0x38] sm:$0xff]  ;;  %s4444_s22 = smov [#allocation2]  }
  0x1b   : > { %s3545_s25 = sshll.u32 %s488_s30, 5  ;;  %v3828_v45 = vpack.c.bf16 %v498_v41, %v496_v40  ;;  %v3830_v46 = vpack.c.bf16 %v503_v43, %v501_v42  ;;  %v500_v47 = vld [vmem:[%s6092_s1 + $0x20] sm:$0xff]  ;;  %v502_v48 = vld [vmem:[%s6092_s1 + $0x30] sm:$0xff]  ;;  %v505_v49 = vld [vmem:[%s6092_s1 + $0x48] sm:$0xff]  ;;  %s4380_s21 = sshll.u32 %s4444_s22, 4  ;;  %s4381_s21 = int_to_ptr.vmem [resolvable:$false] %s4380_s21 }
  0x1c   : > { %s4658_s17 = scalar_lea.vmem %s6091_s0, %s3545_s25  ;;  %v507_v50 = vld [vmem:[%s6092_s1 + $0x58] sm:$0xff]  ;;  %v3832_v51 = vpack.c.bf16 %v502_v48, %v500_v47  ;;  %v504_v54 = vld [vmem:[%s6092_s1 + $0x40] sm:$0xff]  ;;  %v506_v55 = vld [vmem:[%s6092_s1 + $0x50] sm:$0xff]  ;;  %s486_s25 = scalar_lea.vmem [#allocation2], %s485_s29 }
  0x1d   : > { %3813 = vmatpush1.bf16.msra.mxu0 %v3812_v20  ;;  %v520_v44 = vld [vmem:[%s4658_s17 + $0x1] sm:$0xff]  ;;  %v521_v52 = vld [vmem:[%s4658_s17 + $0x9] sm:$0xff]  ;;  %v3834_v53 = vpack.c.bf16 %v507_v50, %v505_v49  ;;  %v511_v57 = vld [vmem:[%s6092_s1 + $0x78] sm:$0xff]  ;;  %v3836_v58 = vpack.c.bf16 %v506_v55, %v504_v54  ;;  %s3145_s26 = sshll.u32 %s486_s25, 4  ;;  %s4382_s18 = scalar_lea.vmem %s4381_s21, 32  ;;  %s6051_s26 = int_to_ptr.vmem [resolvable:$true] %s3145_s26 }
  0x1e   : > { %3815 = vmatprep.subr.bf16.mxu0 %v3814_v21  ;;  %v509_v56 = vld [vmem:[%s6092_s1 + $0x68] sm:$0xff]  ;;  %v522_v59 = vld [vmem:[%s4658_s17 + $0x11] sm:$0xff]  ;;  %v508_v61 = vld [vmem:[%s6092_s1 + $0x60] sm:$0xff]  ;;  %p4383_p0 = scmp.lt.s32.totalorder %s6051_s26, %s4381_s21 }
  0x1f   : > { %v3838_v60 = vpack.c.bf16 %v511_v57, %v509_v56  ;;  %v510_v62 = vld [vmem:[%s6092_s1 + $0x70] sm:$0xff]  ;;  %v513_v63 = vld [vmem:[%s6092_s1 + $0x88] sm:$0xff]  ;;  %v515_v0 = vld [vmem:[%s6092_s1 + $0x98] sm:$0xff] }
  0x20   : > { %v3840_v1 = vpack.c.bf16 %v510_v62, %v508_v61  ;;  %v523_v2 = vld [vmem:[%s4658_s17 + $0x19] sm:$0xf]  ;;  %v3842_v3 = vpack.c.bf16 %v515_v0, %v513_v63  ;;  %v512_v4 = vld [vmem:[%s6092_s1 + $0x80] sm:$0xff]  ;;  %v514_v5 = vld [vmem:[%s6092_s1 + $0x90] sm:$0xff] }
  0x21   : > { %3817 = vmatpush1.bf16.msra.mxu0 %v3816_v26  ;;  %v517_v6 = vld [vmem:[%s6092_s1 + $0xa8] sm:$0xff]  ;;  %v519_v8 = vld [vmem:[%s6092_s1 + $0xb8] sm:$0xff]  ;;  %v3844_v9 = vpack.c.bf16 %v514_v5, %v512_v4  ;;  %v516_v11 = vld [vmem:[%s6092_s1 + $0xa0] sm:$0xff] }
  0x22   : > { %3819 = vmatprep.subr.bf16.mxu0 %v3818_v27  ;;  %v3846_v10 = vpack.c.bf16 %v519_v8, %v517_v6  ;;  %v518_v12 = vld [vmem:[%s6092_s1 + $0xb0] sm:$0xff]  ;;  %v3239_v13 = vld [vmem:[%s6092_s1 + $0x188] sm:$0xff]  ;;  %v3241_v14 = vld [vmem:[%s6092_s1 + $0x198] sm:$0xff] }
  0x23   : > { %v3848_v15 = vpack.c.bf16 %v518_v12, %v516_v11  ;;  %v3850_v16 = vpack.c.bf16 %v3241_v14, %v3239_v13  ;;  %v3238_v17 = vld [vmem:[%s6092_s1 + $0x180] sm:$0xff]  ;;  %v3240_v18 = vld [vmem:[%s6092_s1 + $0x190] sm:$0xff]  ;;  %v3243_v19 = vld [vmem:[%s6092_s1 + $0x1a8] sm:$0xff] }
  0x24   : > { %v3245_v20 = vld [vmem:[%s6092_s1 + $0x1b8] sm:$0xff]  ;;  %v492_v21 = vld [vmem:[%s4658_s17] sm:$0xff]  ;;  %v3852_v22 = vpack.c.bf16 %v3240_v18, %v3238_v17  ;;  %v3244_v25 = vld [vmem:[%s6092_s1 + $0x1b0] sm:$0xff] }
  0x25   : > { %3821 = vmatpush1.bf16.msra.mxu0 %v3820_v32  ;;  %v3854_v23 = vpack.c.bf16 %v3245_v20, %v3243_v19  ;;  %v3242_v24 = vld [vmem:[%s6092_s1 + $0x1a0] sm:$0xff]  ;;  %v3247_v26 = vld [vmem:[%s6092_s1 + $0x1c8] sm:$0xff]  ;;  %v3249_v27 = vld [vmem:[%s6092_s1 + $0x1d8] sm:$0xff] }
  0x26   : > { %3823 = vmatprep.subr.bf16.mxu0 %v3822_v33  ;;  %v3856_v28 = vpack.c.bf16 %v3244_v25, %v3242_v24  ;;  %v493_v29 = vld [vmem:[%s4658_s17 + $0x8] sm:$0xff]  ;;  %v3858_v30 = vpack.c.bf16 %v3249_v27, %v3247_v26  ;;  %v3246_v31 = vld [vmem:[%s6092_s1 + $0x1c0] sm:$0xff]  ;;  %v3248_v32 = vld [vmem:[%s6092_s1 + $0x1d0] sm:$0xff] }
  0x27   : > { %v3251_v33 = vld [vmem:[%s6092_s1 + $0x1e8] sm:$0xff]  ;;  %v3253_v34 = vld [vmem:[%s6092_s1 + $0x1f8] sm:$0xff]  ;;  %v3860_v35 = vpack.c.bf16 %v3248_v32, %v3246_v31  ;;  %v494_v36 = vld [vmem:[%s4658_s17 + $0x10] sm:$0xff] }
  0x28   : > { %v3862_v37 = vpack.c.bf16 %v3253_v34, %v3251_v33  ;;  %v3255_v40 = vld [vmem:[%s6092_s1 + $0x208] sm:$0xff]  ;;  %v3257_v41 = vld [vmem:[%s6092_s1 + $0x218] sm:$0xff]  ;;  %v3266_v57 = vld [vmem:[%s6092_s1 + $0x240] sm:$0xff] }
  0x29   : > { %3825 = vmatpush1.bf16.msra.mxu0 %v3824_v38  ;;  %v3250_v38 = vld [vmem:[%s6092_s1 + $0x1e0] sm:$0xff]  ;;  %v495_v43 = vld [vmem:[%s4658_s17 + $0x18] sm:$0xf]  ;;  %v3259_v47 = vld [vmem:[%s6092_s1 + $0x228] sm:$0xff] }
  0x2a   : > { %3827 = vmatprep.subr.bf16.mxu0 %v3826_v39  ;;  %v3252_v39 = vld [vmem:[%s6092_s1 + $0x1f0] sm:$0xff]  ;;  %v3261_v48 = vld [vmem:[%s6092_s1 + $0x238] sm:$0xff]  ;;  %v752_v61 = vld [vmem:[%s4658_s17 + $0x2] sm:$0xff] }
  0x2b   : > { %v3864_v42 = vpack.c.bf16 %v3252_v39, %v3250_v38  ;;  %v3870_v50 = vpack.c.bf16 %v3261_v48, %v3259_v47  ;;  %v3269_v54 = vld [vmem:[%s6092_s1 + $0x258] sm:$0xff]  ;;  %v3270_v0 = vld [vmem:[%s6092_s1 + $0x260] sm:$0xff]  ;;  %v753_v5 = vld [vmem:[%s4658_s17 + $0xa] sm:$0xff] }
  0x2c   : > { %3230 = vmatmul.mubr.msk.f32.vlgmr.msra.gmra.mrb[0].mxu0 %vm549_vm0, %v520_v44  ;;  %v3866_v44 = vpack.c.bf16 %v3257_v41, %v3255_v40  ;;  %v3274_v8 = vld [vmem:[%s6092_s1 + $0x280] sm:$0xff]  ;;  %v3281_v11 = vld [vmem:[%s6092_s1 + $0x2b8] sm:$0xff]  ;;  %v3283_v17 = vld [vmem:[%s6092_s1 + $0x2c8] sm:$0xff] }
  0x2d   : > { %3829 = vmatpush1.bf16.msra.mxu0 %v3828_v45  ;;  %632 = vmatprep.mubr.f32.mxu0 %v4440_v7  ;;  %v3254_v45 = vld [vmem:[%s6092_s1 + $0x200] sm:$0xff]  ;;  %v754_v13 = vld [vmem:[%s4658_s17 + $0x12] sm:$0xff]  ;;  %v755_v20 = vld [vmem:[%s4658_s17 + $0x1a] sm:$0xf] }
  0x2e   : > { %3831 = vmatprep.subr.bf16.mxu0 %v3830_v46  ;;  %v3256_v46 = vld [vmem:[%s6092_s1 + $0x210] sm:$0xff]  ;;  %v3285_v18 = vld [vmem:[%s6092_s1 + $0x2d8] sm:$0xff]  ;;  %v3287_v24 = vld [vmem:[%s6092_s1 + $0x2e8] sm:$0xff] }
  0x2f   : > { %v3868_v49 = vpack.c.bf16 %v3256_v46, %v3254_v45  ;;  %v3289_v25 = vld [vmem:[%s6092_s1 + $0x2f8] sm:$0xff]  ;;  %v3294_v34 = vld [vmem:[%s6092_s1 + $0x300] sm:$0xff]  ;;  %v891_v46 = vld [vmem:[%s4658_s17 + $0xb] sm:$0xff] }
  0x30   : > { %3231 = vmatmul.mubr.msk.f32.gmra.mrb[2].mxu0 %vm549_vm0, %v521_v52  ;;  %v3260_v52 = vld [vmem:[%s6092_s1 + $0x230] sm:$0xff]  ;;  %v3894_v27 = vpack.c.bf16 %v3289_v25, %v3287_v24  ;;  %v3297_v31 = vld [vmem:[%s6092_s1 + $0x318] sm:$0xff]  ;;  %v890_v38 = vld [vmem:[%s4658_s17 + $0x3] sm:$0xff] }
  0x31   : > { %3833 = vmatpush1.bf16.msra.mxu0 %v3832_v51  ;;  %638 = vmatprep.mubr.f32.mxu0 %v4440_v7  ;;  %v3258_v51 = vld [vmem:[%s6092_s1 + $0x220] sm:$0xff]  ;;  %vm3927_vm3 = vmpackc.low %vm1203_vm1, %vm4441_vm2 }
  0x32   : > { %3835 = vmatprep.subr.bf16.mxu0 %v3834_v53  ;;  %v3267_v53 = vld [vmem:[%s6092_s1 + $0x248] sm:$0xff]  ;;  %v3872_v55 = vpack.c.bf16 %v3260_v52, %v3258_v51  ;;  %v3298_v41 = vld [vmem:[%s6092_s1 + $0x320] sm:$0xff]  ;;  %v3309_v51 = vld [vmem:[%s6092_s1 + $0x378] sm:$0xff] }
  0x33   : > { %v3874_v56 = vpack.c.bf16 %v3269_v54, %v3267_v53  ;;  %v3302_v48 = vld [vmem:[%s6092_s1 + $0x340] sm:$0xff]  ;;  %v892_v53 = vld [vmem:[%s4658_s17 + $0x13] sm:$0xff]  ;;  %vm4103_vm11 = vmpackc.low %vm2183_vm10, %vm4441_vm2 }
  0x34   : > { %3232 = vmatmul.mubr.msk.f32.gmra.mrb[4].mxu0 %vm549_vm0, %v522_v59  ;;  %v3271_v59 = vld [vmem:[%s6092_s1 + $0x268] sm:$0xff] }
  0x35   : > { %3837 = vmatpush1.bf16.msra.mxu0 %v3836_v58  ;;  %644 = vmatprep.mubr.f32.mxu0 %v4440_v7  ;;  %v3268_v58 = vld [vmem:[%s6092_s1 + $0x250] sm:$0xff] }
  0x36   : > { %3839 = vmatprep.subr.bf16.mxu0 %v3838_v60  ;;  %v3273_v60 = vld [vmem:[%s6092_s1 + $0x278] sm:$0xff]  ;;  %v3876_v62 = vpack.c.bf16 %v3268_v58, %v3266_v57  ;;  %v3311_v57 = vld [vmem:[%s6092_s1 + $0x388] sm:$0xff] }
  0x37   : > { %v3878_v63 = vpack.c.bf16 %v3273_v60, %v3271_v59  ;;  %v3313_v58 = vld [vmem:[%s6092_s1 + $0x398] sm:$0xff] }
  0x38   : > { %3233 = vmatmul.mubr.msk.f32.gmra.mrb[6].mxu0 %vm549_vm0, %v523_v2  ;;  %v3275_v2 = vld [vmem:[%s6092_s1 + $0x288] sm:$0xff]  ;;  %v893_v60 = vld [vmem:[%s4658_s17 + $0x1b] sm:$0xf] }
  0x39   : > { %3841 = vmatpush1.bf16.msra.mxu0 %v3840_v1  ;;  %727 = vmatprep.mubr.f32.mxu0 %v4440_v7  ;;  %v3272_v1 = vld [vmem:[%s6092_s1 + $0x270] sm:$0xff] }
  0x3a   : > { %3843 = vmatprep.subr.bf16.mxu0 %v3842_v3  ;;  %v3277_v3 = vld [vmem:[%s6092_s1 + $0x298] sm:$0xff]  ;;  %v3880_v4 = vpack.c.bf16 %v3272_v1, %v3270_v0  ;;  %v3315_v0 = vld [vmem:[%s6092_s1 + $0x3a8] sm:$0xff] }
  0x3b   : > { %v3882_v6 = vpack.c.bf16 %v3277_v3, %v3275_v2  ;;  %v3317_v1 = vld [vmem:[%s6092_s1 + $0x3b8] sm:$0xff] }
  0x3c   : > { %v3918_v3 = vpack.c.bf16 %v3317_v1, %v3315_v0  ;;  %v1385_v0 = vld [vmem:[%s6095_s4 + $0x40] sm:$0xff]  ;;  %v1386_v1 = vld [vmem:[%s6095_s4 + $0x48] sm:$0xff] }
  0x3d   : > { %3845 = vmatpush1.bf16.msra.mxu0 %v3844_v9  ;;  %v3276_v9 = vld [vmem:[%s6092_s1 + $0x290] sm:$0xff] }
  0x3e   : > { %3847 = vmatprep.subr.bf16.mxu0 %v3846_v10  ;;  %v3279_v10 = vld [vmem:[%s6092_s1 + $0x2a8] sm:$0xff]  ;;  %v3884_v12 = vpack.c.bf16 %v3276_v9, %v3274_v8 }
  0x3f   : > { %v3886_v14 = vpack.c.bf16 %v3281_v11, %v3279_v10  ;;  %v1028_v8 = vld [vmem:[%s4658_s17 + $0x4] sm:$0xff]  ;;  %v1029_v9 = vld [vmem:[%s4658_s17 + $0xc] sm:$0xff]  ;;  %v1030_v10 = vld [vmem:[%s4658_s17 + $0x14] sm:$0xff] }
  0x40   : > { %v1031_v11 = vld [vmem:[%s4658_s17 + $0x1c] sm:$0xf]  ;;  %s4376_s17 = scalar_lea.vmem %s6051_s26, 16 }
  0x41   : > { %3849 = vmatpush1.bf16.msra.mxu0 %v3848_v15  ;;  %v3278_v15 = vld [vmem:[%s6092_s1 + $0x2a0] sm:$0xff]  ;;  %p4377_p11 = scmp.ne.s32.totalorder %s6051_s26, %s4376_s17  ;;  %p4384_p1 = scmp.lt.s32.totalorder %s4382_s18, %s4376_s17 }
  0x42   : > { %3851 = vmatprep.subr.bf16.mxu0 %v3850_v16  ;;  %v3280_v16 = vld [vmem:[%s6092_s1 + $0x2b0] sm:$0xff] }
  0x43   : > { %v3888_v19 = vpack.c.bf16 %v3280_v16, %v3278_v15  ;;  %v1166_v15 = vld [vmem:[%s6093_s2] sm:$0x3]  ;;  %p4378_p12 = pnand %p4377_p11, %p4563_p5  ;;  %p4385_p2 = por %p4384_p1, %p4383_p0 }
  0x44   : > { %3234 = vmatmul.mubr.msk.f32.vlgmr.msra.gmra.mrb[0].mxu0 %vm549_vm0, %v492_v21  ;;  %v3890_v21 = vpack.c.bf16 %v3285_v18, %v3283_v17 }
  0x45   : > { %3853 = vmatpush1.bf16.msra.mxu0 %v3852_v22  ;;  %733 = vmatprep.mubr.f32.mxu0 %v4440_v7  ;;  %v3282_v22 = vld [vmem:[%s6092_s1 + $0x2c0] sm:$0xff]  ;;  %p4379_p13 = pneg %p4378_p12 }
  0x46   : > { %3855 = vmatprep.subr.bf16.mxu0 %v3854_v23  ;;  %v3284_v23 = vld [vmem:[%s6092_s1 + $0x2d0] sm:$0xff] }
  0x47   : > { %v3892_v26 = vpack.c.bf16 %v3284_v23, %v3282_v22  ;;  %p4386_p3 = pnand %p4385_p2, %p4379_p13 }
  0x48   : > { %3235 = vmatmul.mubr.msk.f32.gmra.mrb[2].mxu0 %vm549_vm0, %v493_v29  ;;  %v3288_v29 = vld [vmem:[%s6092_s1 + $0x2f0] sm:$0xff] }
  0x49   : > { %3857 = vmatpush1.bf16.msra.mxu0 %v3856_v28  ;;  %739 = vmatprep.mubr.f32.mxu0 %v4440_v7  ;;  %v3286_v28 = vld [vmem:[%s6092_s1 + $0x2e0] sm:$0xff] }
  0x4a   : > { %3859 = vmatprep.subr.bf16.mxu0 %v3858_v30  ;;  %v3295_v30 = vld [vmem:[%s6092_s1 + $0x308] sm:$0xff]  ;;  %v3896_v32 = vpack.c.bf16 %v3288_v29, %v3286_v28 }
  0x4b   : > { %v3898_v33 = vpack.c.bf16 %v3297_v31, %v3295_v30 }
  0x4c   : > { %3236 = vmatmul.mubr.msk.f32.gmra.mrb[4].mxu0 %vm549_vm0, %v494_v36  ;;  %v3299_v36 = vld [vmem:[%s6092_s1 + $0x328] sm:$0xff] }
  0x4d   : > { %3861 = vmatpush1.bf16.msra.mxu0 %v3860_v35  ;;  %745 = vmatprep.mubr.f32.mxu0 %v4440_v7  ;;  %v3296_v35 = vld [vmem:[%s6092_s1 + $0x310] sm:$0xff] }
  0x4e   : > { %3863 = vmatprep.subr.bf16.mxu0 %v3862_v37  ;;  %v3301_v37 = vld [vmem:[%s6092_s1 + $0x338] sm:$0xff]  ;;  %v3900_v39 = vpack.c.bf16 %v3296_v35, %v3294_v34 }
  0x4f   : > { %v3902_v40 = vpack.c.bf16 %v3301_v37, %v3299_v36 }
  0x50   : > { %3237 = vmatmul.mubr.msk.f32.gmra.mrb[6].mxu0 %vm549_vm0, %v495_v43  ;;  %v3303_v43 = vld [vmem:[%s6092_s1 + $0x348] sm:$0xff] }
  0x51   : > { %3865 = vmatpush1.bf16.msra.mxu0 %v3864_v42  ;;  %857 = vmatprep.mubr.f32.mxu0 %v4440_v7  ;;  %v3300_v42 = vld [vmem:[%s6092_s1 + $0x330] sm:$0xff] }
  0x52   : > { %3867 = vmatprep.subr.bf16.mxu0 %v3866_v44  ;;  %v3305_v44 = vld [vmem:[%s6092_s1 + $0x358] sm:$0xff]  ;;  %v3904_v45 = vpack.c.bf16 %v3300_v42, %v3298_v41 }
  0x53   : > { %v3906_v47 = vpack.c.bf16 %v3305_v44, %v3303_v43 }
  0x55   : > { %3869 = vmatpush1.bf16.msra.mxu0 %v3868_v49  ;;  %v3304_v49 = vld [vmem:[%s6092_s1 + $0x350] sm:$0xff] }
  0x56   : > { %3871 = vmatprep.subr.bf16.mxu0 %v3870_v50  ;;  %v3307_v50 = vld [vmem:[%s6092_s1 + $0x368] sm:$0xff]  ;;  %v3908_v52 = vpack.c.bf16 %v3304_v49, %v3302_v48  ;;  %v1377_v49 = vld [vmem:[%s6095_s4] sm:$0xff] }
  0x57   : > { %v3910_v54 = vpack.c.bf16 %v3309_v51, %v3307_v50  ;;  %v1195_v48 = vld [vmem:[%s6094_s3 + $0x8] sm:$0x3f]  ;;  %v3326_v51 = vld [vmem:[%s6094_s3 + $0x10] sm:$0xff] }
  0x58   : > { %v1378_v50 = vld [vmem:[%s6095_s4 + $0x8] sm:$0xff] }
  0x59   : > { %3873 = vmatpush1.bf16.msra.mxu0 %v3872_v55  ;;  %v3306_v55 = vld [vmem:[%s6092_s1 + $0x360] sm:$0xff] }
  0x5a   : > { %3875 = vmatprep.subr.bf16.mxu0 %v3874_v56  ;;  %v3308_v56 = vld [vmem:[%s6092_s1 + $0x370] sm:$0xff] }
  0x5b   : > { %v3912_v59 = vpack.c.bf16 %v3308_v56, %v3306_v55  ;;  %v1380_v55 = vld [vmem:[%s6095_s4 + $0x18] sm:$0xff] }
  0x5c   : > { %3262 = vmatmul.mubr.msk.f32.vlgmr.msra.gmra.mrb[0].mxu0 %vm549_vm0, %v752_v61  ;;  %v3914_v61 = vpack.c.bf16 %v3313_v58, %v3311_v57  ;;  %v3327_v56 = vld [vmem:[%s6094_s3 + $0x18] sm:$0x3f]  ;;  %v1381_v58 = vld [vmem:[%s6095_s4 + $0x20] sm:$0xff] }
  0x5d   : > { %3877 = vmatpush1.bf16.msra.mxu0 %v3876_v62  ;;  %863 = vmatprep.mubr.f32.mxu0 %v4440_v7  ;;  %v3310_v62 = vld [vmem:[%s6092_s1 + $0x380] sm:$0xff] }
  0x5e   : > { %3879 = vmatprep.subr.bf16.mxu0 %v3878_v63  ;;  %v3312_v63 = vld [vmem:[%s6092_s1 + $0x390] sm:$0xff] }
  0x5f   : > { %v3916_v2 = vpack.c.bf16 %v3312_v63, %v3310_v62  ;;  %v1384_v62 = vld [vmem:[%s6095_s4 + $0x38] sm:$0xff] }
  0x60   : > { %3263 = vmatmul.mubr.msk.f32.gmra.mrb[2].mxu0 %vm549_vm0, %v753_v5  ;;  %v3316_v5 = vld [vmem:[%s6092_s1 + $0x3b0] sm:$0xff] }
  0x61   : > { %3881 = vmatpush1.bf16.msra.mxu0 %v3880_v4  ;;  %869 = vmatprep.mubr.f32.mxu0 %v4440_v7  ;;  %v3314_v4 = vld [vmem:[%s6092_s1 + $0x3a0] sm:$0xff] }
  0x62   : > { %3883 = vmatprep.subr.bf16.mxu0 %v3882_v6  ;;  %v3920_v6 = vpack.c.bf16 %v3316_v5, %v3314_v4  ;;  %v1388_v4 = vld [vmem:[%s6095_s4 + $0x58] sm:$0xff] }
  0x64   : > { %3264 = vmatmul.mubr.msk.f32.gmra.mrb[4].mxu0 %vm549_vm0, %v754_v13 }
  0x65   : > { %3885 = vmatpush1.bf16.msra.mxu0 %v3884_v12  ;;  %875 = vmatprep.mubr.f32.mxu0 %v4440_v7  ;;  %v1168_v12 = vlaneseq }
  0x66   : > { %3887 = vmatprep.subr.bf16.mxu0 %v3886_v14 }
  0x67   : > { %v5002_v13 = vshrl.u32 %v1168_v12, 7 }
  0x68   : > { %3265 = vmatmul.mubr.msk.f32.gmra.mrb[6].mxu0 %vm549_vm0, %v755_v20 }
  0x69   : > { %3889 = vmatpush1.bf16.msra.mxu0 %v3888_v19  ;;  %995 = vmatprep.mubr.f32.mxu0 %v4440_v7  ;;  %v1170_v14 = vsub.s32 0, %v5002_v13  ;;  %v1174_v16 = vsub.s32 1, %v5002_v13  ;;  %v2178_v13 = vld [vmem:[%s6098_s7] sm:$0x1f] }
  0x6a   : > { %3891 = vmatprep.subr.bf16.mxu0 %v3890_v21 }
  0x6b   : > { %v1171_v17 = vrot.slane %v1166_v15, %v1170_v14  ;;  %v1175_v19 = vrot.slane %v1166_v15, %v1174_v16  ;;  %v1393_v15 = vld [vmem:[%s6095_s4 + $0x80] sm:$0xff] }
  0x6d   : > { %3893 = vmatpush1.bf16.msra.mxu0 %v3892_v26 }
  0x6e   : > { %3895 = vmatprep.subr.bf16.mxu0 %v3894_v27 }
  0x71   : > { %3897 = vmatpush1.bf16.msra.mxu0 %v3896_v32 }
  0x72   : > { %3899 = vmatprep.subr.bf16.mxu0 %v3898_v33 }
  0x74   : > { %3290 = vmatmul.mubr.msk.f32.vlgmr.msra.gmra.mrb[0].mxu0 %vm549_vm0, %v890_v38 }
  0x75   : > { %3901 = vmatpush1.bf16.msra.mxu0 %v3900_v39  ;;  %1001 = vmatprep.mubr.f32.mxu0 %v4440_v7 }
  0x76   : > { %3903 = vmatprep.subr.bf16.mxu0 %v3902_v40 }
  0x78   : > { %3291 = vmatmul.mubr.msk.f32.gmra.mrb[2].mxu0 %vm549_vm0, %v891_v46 }
  0x79   : > { %3905 = vmatpush1.bf16.msra.mxu0 %v3904_v45  ;;  %1007 = vmatprep.mubr.f32.mxu0 %v4440_v7 }
  0x7a   : > { %3907 = vmatprep.subr.bf16.mxu0 %v3906_v47  ;;  %v1194_v47 = vld [vmem:[%s6094_s3] sm:$0xff] }
  0x7c   : > { %3292 = vmatmul.mubr.msk.f32.gmra.mrb[4].mxu0 %vm549_vm0, %v892_v53  ;;  %v4442_v53 = vmov 0.0|0.0  }
  0x7d   : > { %3909 = vmatpush1.bf16.msra.mxu0 %v3908_v52  ;;  %1013 = vmatprep.mubr.f32.mxu0 %v4440_v7  ;;  %v3943_v52 = vpack.c.bf16 %v1378_v50, %v1377_v49  ;;  %v3344_v50 = vld [vmem:[%s6095_s4 + $0xf8] sm:$0xff] }
  0x7e   : > { %3911 = vmatprep.subr.bf16.mxu0 %v3910_v54  ;;  %v1379_v54 = vld [vmem:[%s6095_s4 + $0x10] sm:$0xff] }
  0x7f   : > { %v3946_v57 = vpack.c.bf16 %v1380_v55, %v1379_v54  ;;  %v3346_v54 = vld [vmem:[%s6095_s4 + $0x108] sm:$0xff]  ;;  %v3347_v55 = vld [vmem:[%s6095_s4 + $0x110] sm:$0xff] }
  0x80   : > { %3293 = vmatmul.mubr.msk.f32.gmra.mrb[6].mxu0 %vm549_vm0, %v893_v60 }
  0x81   : > { %3913 = vmatpush1.bf16.msra.mxu0 %v3912_v59  ;;  %1133 = vmatprep.mubr.f32.mxu0 %v4440_v7  ;;  %v1382_v59 = vld [vmem:[%s6095_s4 + $0x28] sm:$0xff] }
  0x82   : > { %3915 = vmatprep.subr.bf16.mxu0 %v3914_v61  ;;  %v3949_v60 = vpack.c.bf16 %v1382_v59, %v1381_v58  ;;  %v1383_v61 = vld [vmem:[%s6095_s4 + $0x30] sm:$0xff]  ;;  %v3349_v58 = vld [vmem:[%s6095_s4 + $0x120] sm:$0xff] }
  0x83   : > { %v3952_v63 = vpack.c.bf16 %v1384_v62, %v1383_v61  ;;  %v3351_v61 = vld [vmem:[%s6095_s4 + $0x130] sm:$0xff] }
  0x85   : > { %3917 = vmatpush1.bf16.msra.mxu0 %v3916_v2  ;;  %v3955_v2 = vpack.c.bf16 %v1386_v1, %v1385_v0  ;;  %v3353_v0 = vld [vmem:[%s6095_s4 + $0x140] sm:$0xff] }
  0x86   : > { %3919 = vmatprep.subr.bf16.mxu0 %v3918_v3  ;;  %v1387_v3 = vld [vmem:[%s6095_s4 + $0x50] sm:$0xff] }
  0x87   : > { %v3958_v5 = vpack.c.bf16 %v1388_v4, %v1387_v3  ;;  %v3358_v3 = vld [vmem:[%s6096_s5 + $0xb8] sm:$0xff]  ;;  %v3360_v4 = vld [vmem:[%s6096_s5 + $0xc8] sm:$0xff] }
  0x89   : > { %3921 = vmatpush1.bf16.msra.mxu0 %v3920_v6  ;;  %v1389_v6 = vld [vmem:[%s6095_s4 + $0x60] sm:$0xff] }
  0x8c   : > { %3318 = vmatmul.mubr.msk.f32.vlgmr.msra.gmra.mrb[0].mxu0 %vm549_vm0, %v1028_v8  ;;  %v1390_v8 = vld [vmem:[%s6095_s4 + $0x68] sm:$0xff] }
  0x8d   : > { %1139 = vmatprep.mubr.f32.mxu0 %v4440_v7 }
  0x90   : > { %3319 = vmatmul.mubr.msk.f32.gmra.mrb[2].mxu0 %vm549_vm0, %v1029_v9  ;;  %v3961_v9 = vpack.c.bf16 %v1390_v8, %v1389_v6  ;;  %v4002_v6 = vpack.c.bf16 %v3360_v4, %v3358_v3  ;;  %v3359_v8 = vld [vmem:[%s6096_s5 + $0xc0] sm:$0xff]  ;;  %v1585_v4 = vld [vmem:[%s6096_s5 + $0x30] sm:$0xff] }
  0x91   : > { %1145 = vmatprep.mubr.f32.mxu0 %v4440_v7  ;;  %v1583_v3 = vld [vmem:[%s6096_s5 + $0x20] sm:$0xff] }
  0x94   : > { %3320 = vmatmul.mubr.msk.f32.gmra.mrb[4].mxu0 %vm549_vm0, %v1030_v10  ;;  %v1391_v10 = vld [vmem:[%s6095_s4 + $0x70] sm:$0xff] }
  0x95   : > { %1151 = vmatprep.mubr.f32.mxu0 %v4440_v7 }
  0x98   : > { %3321 = vmatmul.mubr.msk.f32.gmra.mrb[6].mxu0 %vm549_vm0, %v1031_v11  ;;  %v1392_v11 = vld [vmem:[%s6095_s4 + $0x78] sm:$0xff]  ;;  %vm2967_vm0 = vcmask 982016  }
  0x99   : > { %2254 = vmatprep.mubr.f32.mxu0 %v4440_v7  ;;  %v3964_v12 = vpack.c.bf16 %v1392_v11, %v1391_v10  ;;  %v3364_v10 = vld [vmem:[%s6096_s5 + $0xe8] sm:$0xff] }
 0x15f   : > { %v1135_v18 = vpop.f32.mrb[0].mxu0 }
 0x160   : > { %v1137_v20 = vpop.f32.mrb[1].mxu0  ;;  %v1178_v21 = vadd.f32 %v1171_v17, %v1135_v18 }
 0x161   : > { %v1179_v22 = vadd.f32 %v1175_v19, %v1137_v20  ;;  %v1396_v20 = vld [vmem:[%s6095_s4 + $0x98] sm:$0xff] }
 0x162   : > { %v1186_v27 = vmax.f32 %v1178_v21, 0.0 }
 0x163   : > { %v1141_v23 = vpop.f32.mrb[2].mxu0  ;;  %v1187_v29 = vmax.f32 %v1179_v22, 0.0  ;;  %v1397_v22 = vld [vmem:[%s6095_s4 + $0xa0] sm:$0xff] }
 0x164   : > { %v1180_v24 = vadd.f32 %v1171_v17, %v1141_v23  ;;  %v1143_v25 = vpop.f32.mrb[3].mxu0 }
 0x165   : > { %v1181_v26 = vadd.f32 %v1175_v19, %v1143_v25 }
 0x166   : > { %v1188_v28 = vmax.f32 %v1180_v24, 0.0 }
 0x167   : > { %v1189_v30 = vmax.f32 %v1181_v26, 0.0  ;;  %v1147_v31 = vpop.f32.mrb[4].mxu0 }
 0x168   : > { %v1149_v32 = vpop.f32.mrb[5].mxu0  ;;  %v3924_v33 = vpack.c.bf16 %v1188_v28, %v1186_v27  ;;  %v1182_v35 = vadd.f32 %v1171_v17, %v1147_v31  ;;  %v3334_v27 = vld [vmem:[%s6095_s4 + $0xa8] sm:$0xff]  ;;  %v3335_v28 = vld [vmem:[%s6095_s4 + $0xb0] sm:$0xff] }
 0x169   : > { %v3922_v34 = vpack.c.bf16 %v1189_v30, %v1187_v29  ;;  %v1183_v36 = vadd.f32 %v1175_v19, %v1149_v32 }
 0x16a   : > { %v1190_v41 = vmax.f32 %v1182_v35, 0.0  ;;  %v3337_v35 = vld [vmem:[%s6095_s4 + $0xc0] sm:$0xff] }
 0x16b   : > { %v1153_v37 = vpop.f32.mrb[6].mxu0  ;;  %3923 = vmatprep.subr.bf16.mxu1 %v3922_v34  ;;  %v1191_v43 = vmax.f32 %v1183_v36, 0.0 }
 0x16c   : > { %v1184_v38 = vadd.f32 %v1171_v17, %v1153_v37  ;;  %v1155_v39 = vpop.f32.mrb[7].mxu0  ;;  %3925 = vmatpush1.bf16.msra.mxu1 %v3924_v33  ;;  %v1394_v17 = vld [vmem:[%s6095_s4 + $0x88] sm:$0xff] }
 0x16d   : > { %v1185_v40 = vadd.f32 %v1175_v19, %v1155_v39  ;;  %v3967_v18 = vpack.c.bf16 %v1394_v17, %v1393_v15  ;;  %v1395_v19 = vld [vmem:[%s6095_s4 + $0x90] sm:$0xff]  ;;  %v3363_v17 = vld [vmem:[%s6096_s5 + $0xe0] sm:$0xff] }
 0x16e   : > { %v1192_v42 = vmax.f32 %v1184_v38, 0.0  ;;  %v3970_v21 = vpack.c.bf16 %v1396_v20, %v1395_v19  ;;  %v3361_v15 = vld [vmem:[%s6096_s5 + $0xd0] sm:$0xff]  ;;  %v3368_v19 = vld [vmem:[%s6096_s5 + $0x108] sm:$0xff] }
 0x16f   : > { %v1193_v44 = vmax.f32 %v1185_v40, 0.0  ;;  %v4008_v20 = vpack.c.bf16 %v3363_v17, %v3361_v15  ;;  %v1587_v17 = vld [vmem:[%s6096_s5 + $0x40] sm:$0xff] }
 0x170   : > { %v3929_v45 = vpack.c.bf16 %v1192_v42, %v1190_v41  ;;  %v3338_v41 = vld [vmem:[%s6095_s4 + $0xc8] sm:$0xff]  ;;  %v3339_v42 = vld [vmem:[%s6095_s4 + $0xd0] sm:$0xff] }
 0x171   : > { %v3926_v46 = vpack.c.bf16 %v1193_v44, %v1191_v43  ;;  %v3979_v43 = vpack.c.bf16 %v3339_v42, %v3338_v41  ;;  %v3340_v44 = vld [vmem:[%s6095_s4 + $0xd8] sm:$0xff] }
 0x173   : > { %3928 = vmatprep.subr.msk.bf16.mxu1 %vm3927_vm3, %v3926_v46 }
 0x174   : > { %3931 = vmatpush1.bf16.msk.msra.mxu1 %vm3927_vm3, %v3929_v45 }
 0x175   : > { %3933 = vmatprep.subr.bf16.mxu1 %v3922_v34  ;;  %v3336_v34 = vld [vmem:[%s6095_s4 + $0xb8] sm:$0xff] }
 0x176   : > { %v3976_v40 = vpack.c.bf16 %v3337_v35, %v3336_v34  ;;  %v3373_v34 = vld [vmem:[%s6096_s5 + $0x130] sm:$0xff]  ;;  %v3375_v35 = vld [vmem:[%s6096_s5 + $0x140] sm:$0xff] }
 0x177   : > { %3324 = vmatmul.mubr.msk.f32.vlgmr.msra.gmra.mrb[0].mxu1 %vm1196_vm4, %v1194_v47  ;;  %v3342_v47 = vld [vmem:[%s6095_s4 + $0xe8] sm:$0xff] }
 0x178   : > { %3935 = vmatpush1.bf16.msra.mxu1 %v3924_v33  ;;  %1280 = vmatprep.mubr.f32.mxu1 %v4440_v7  ;;  %v3973_v33 = vpack.c.bf16 %v3335_v28, %v3334_v27  ;;  %v3369_v28 = vld [vmem:[%s6096_s5 + $0x110] sm:$0xff] }
 0x179   : > { %3938 = vmatprep.subr.msk.bf16.mxu1 %vm3927_vm3, %v3926_v46 }
 0x17b   : > { %3325 = vmatmul.mubr.msk.f32.gmra.mrb[2].mxu1 %vm1196_vm4, %v1195_v48  ;;  %v3343_v48 = vld [vmem:[%s6095_s4 + $0xf0] sm:$0xff] }
 0x17c   : > { %3941 = vmatpush1.bf16.msk.msra.mxu1 %vm3927_vm3, %v3929_v45  ;;  %1360 = vmatprep.mubr.f32.mxu1 %v4440_v7  ;;  %v3341_v45 = vld [vmem:[%s6095_s4 + $0xe0] sm:$0xff]  ;;  %v3985_v49 = vpack.c.bf16 %v3343_v48, %v3342_v47 }
 0x17d   : > { %3942 = vmatprep.subr.bf16.mxu1 %v4442_v53  ;;  %v3982_v46 = vpack.c.bf16 %v3341_v45, %v3340_v44 }
 0x17f   : > { %3330 = vmatmul.mubr.msk.f32.vlgmr.msra.gmra.mrb[4].mxu1 %vm1196_vm4, %v3326_v51  ;;  %v3345_v51 = vld [vmem:[%s6095_s4 + $0x100] sm:$0xff] }
 0x180   : > { %1366 = vmatprep.mubr.f32.mxu1 %v4440_v7  ;;  %3944 = vmatpush1.bf16.msra.mxu1 %v3943_v52  ;;  %v3988_v52 = vpack.c.bf16 %v3345_v51, %v3344_v50  ;;  %v1581_v50 = vld [vmem:[%s6096_s5 + $0x10] sm:$0xff] }
 0x181   : > { %3945 = vmatprep.subr.bf16.mxu1 %v4442_v53 }
 0x183   : > { %3331 = vmatmul.mubr.msk.f32.gmra.mrb[6].mxu1 %vm1196_vm4, %v3327_v56  ;;  %v3991_v56 = vpack.c.bf16 %v3347_v55, %v3346_v54 }
 0x184   : > { %3947 = vmatpush1.bf16.msra.mxu1 %v3946_v57  ;;  %v3348_v57 = vld [vmem:[%s6095_s4 + $0x118] sm:$0xff] }
 0x185   : > { %3948 = vmatprep.subr.bf16.mxu1 %v4442_v53  ;;  %v3994_v59 = vpack.c.bf16 %v3349_v58, %v3348_v57  ;;  %v1586_v57 = vld [vmem:[%s6096_s5 + $0x38] sm:$0xff] }
 0x188   : > { %3950 = vmatpush1.bf16.msra.mxu1 %v3949_v60  ;;  %v3350_v60 = vld [vmem:[%s6095_s4 + $0x128] sm:$0xff] }
 0x189   : > { %3951 = vmatprep.subr.bf16.mxu1 %v4442_v53  ;;  %v3997_v62 = vpack.c.bf16 %v3351_v61, %v3350_v60 }
 0x18c   : > { %3953 = vmatpush1.bf16.msra.mxu1 %v3952_v63  ;;  %v3352_v63 = vld [vmem:[%s6095_s4 + $0x138] sm:$0xff] }
 0x18d   : > { %3954 = vmatprep.subr.bf16.mxu1 %v4442_v53  ;;  %v4000_v1 = vpack.c.bf16 %v3353_v0, %v3352_v63 }
 0x190   : > { %3956 = vmatpush1.bf16.msra.mxu1 %v3955_v2  ;;  %v3354_v2 = vld [vmem:[%s6095_s4 + $0x148] sm:$0xff] }
 0x191   : > { %3957 = vmatprep.subr.bf16.mxu1 %v4442_v53 }
 0x194   : > { %3959 = vmatpush1.bf16.msra.mxu1 %v3958_v5  ;;  %v3357_v5 = vld [vmem:[%s6096_s5 + $0xb0] sm:$0xff] }
 0x195   : > { %3960 = vmatprep.subr.bf16.mxu1 %v4442_v53  ;;  %v4004_v11 = vpack.c.bf16 %v3359_v8, %v3357_v5  ;;  %v1590_v8 = vld [vmem:[%s6096_s5 + $0x58] sm:$0xff] }
 0x198   : > { %3962 = vmatpush1.bf16.msra.mxu1 %v3961_v9  ;;  %v3362_v9 = vld [vmem:[%s6096_s5 + $0xd8] sm:$0xff] }
 0x199   : > { %3963 = vmatprep.subr.bf16.mxu1 %v4442_v53 }
 0x19c   : > { %3965 = vmatpush1.bf16.msra.mxu1 %v3964_v12  ;;  %v4006_v12 = vpack.c.bf16 %v3364_v10, %v3362_v9 }
 0x19d   : > { %3966 = vmatprep.subr.bf16.mxu1 %v4442_v53 }
 0x1a0   : > { %3968 = vmatpush1.bf16.msra.mxu1 %v3967_v18  ;;  %v3366_v18 = vld [vmem:[%s6096_s5 + $0xf8] sm:$0xff] }
 0x1a1   : > { %3969 = vmatprep.subr.bf16.mxu1 %v4442_v53 }
 0x1a4   : > { %3971 = vmatpush1.bf16.msra.mxu1 %v3970_v21  ;;  %v4010_v21 = vpack.c.bf16 %v3368_v19, %v3366_v18  ;;  %v1589_v18 = vld [vmem:[%s6096_s5 + $0x50] sm:$0xff]  ;;  %v1592_v19 = vld [vmem:[%s6096_s5 + $0x68] sm:$0xff] }
 0x1a5   : > { %1445 = vmatprep.subr.mxu1 %v4440_v7 }
 0x1a8   : > { %1446 = vmatpush1.msra.mxu1 %v1397_v22  ;;  %v3365_v22 = vld [vmem:[%s6096_s5 + $0xf0] sm:$0xff] }
 0x1a9   : > { %3972 = vmatprep.subr.bf16.mxu1 %v4442_v53 }
 0x24a   : > { %v1276_v23 = vpop.f32.mrb[0].mxu1 }
 0x24b   : > { %v1278_v24 = vpop.f32.mrb[1].mxu1 }
 0x24e   : > { %v1282_v25 = vpop.f32.mrb[2].mxu1 }
 0x24f   : > { %v1284_v26 = vpop.f32.mrb[3].mxu1 }
 0x252   : > { %v1362_v29 = vpop.f32.mrb[4].mxu1 }
 0x253   : > { %v1373_v30 = vmax.f32 %v1276_v23, %v1362_v29  ;;  %v1364_v31 = vpop.f32.mrb[5].mxu1  ;;  %v3367_v23 = vld [vmem:[%s6096_s5 + $0x100] sm:$0xff] }
 0x254   : > { %v1374_v32 = vmax.f32 %v1278_v24, %v1364_v31  ;;  %v3370_v24 = vld [vmem:[%s6096_s5 + $0x118] sm:$0xff]  ;;  %v3371_v29 = vld [vmem:[%s6096_s5 + $0x120] sm:$0xff] }
 0x255   : > { %v3374_v31 = vld [vmem:[%s6096_s5 + $0x138] sm:$0xff] }
 0x256   : > { %v1368_v36 = vpop.f32.mrb[6].mxu1  ;;  %3332 = vmatprep.mubr.msk.f32.mxu1 %vm1398_vm5, %v1374_v32 }
 0x257   : > { %v1375_v37 = vmax.f32 %v1282_v25, %v1368_v36  ;;  %v1370_v38 = vpop.f32.mrb[7].mxu1  ;;  %1470 = vmatmul.mubr.f32.vlgmr.msra.gmra.mrb[8].mxu1 %v1373_v30  ;;  %v3372_v25 = vld [vmem:[%s6096_s5 + $0x128] sm:$0xff]  ;;  %v4020_v36 = vpack.c.bf16 %v3375_v35, %v3373_v34  ;;  %v3390_v34 = vld [vmem:[%s6096_s5 + $0x178] sm:$0xff]  ;;  %v3387_v35 = vld [vmem:[%s6096_s5 + $0x160] sm:$0xff] }
 0x258   : > { %v1376_v39 = vmax.f32 %v1284_v26, %v1370_v38  ;;  %3974 = vmatpush1.bf16.msra.mxu1 %v3973_v33  ;;  %v4012_v26 = vpack.c.bf16 %v3367_v23, %v3365_v22  ;;  %v4014_v27 = vpack.c.bf16 %v3372_v25, %v3370_v24  ;;  %v3377_v38 = vld [vmem:[%s6096_s5 + $0x150] sm:$0xf]  ;;  %v1591_v23 = vld [vmem:[%s6096_s5 + $0x60] sm:$0xff]  ;;  %v1596_v25 = vld [vmem:[%s6096_s5 + $0x88] sm:$0xff] }
 0x259   : > { %3975 = vmatprep.subr.bf16.mxu1 %v4442_v53  ;;  %v1593_v24 = vld [vmem:[%s6096_s5 + $0x70] sm:$0xff] }
 0x25a   : > { %3333 = vmatprep.mubr.msk.f32.mxu1 %vm1398_vm5, %v1376_v39 }
 0x25b   : > { %1475 = vmatmul.mubr.f32.gmra.mrb[10].mxu1 %v1375_v37 }
 0x25c   : > { %3977 = vmatpush1.bf16.msra.mxu1 %v3976_v40  ;;  %3355 = vmatprep.mubr.msk.f32.mxu1 %vm1398_vm5, %v1374_v32  ;;  %v3376_v32 = vld [vmem:[%s6096_s5 + $0x148] sm:$0xff]  ;;  %v1582_v40 = vld [vmem:[%s6096_s5 + $0x18] sm:$0xff] }
 0x25d   : > { %3978 = vmatprep.subr.bf16.mxu1 %v4442_v53  ;;  %v4018_v33 = vpack.c.bf16 %v3376_v32, %v3374_v31  ;;  %v1600_v32 = vld [vmem:[%s6096_s5 + $0xa8] sm:$0xf] }
 0x260   : > { %3980 = vmatpush1.bf16.msra.mxu1 %v3979_v43 }
 0x261   : > { %3981 = vmatprep.subr.bf16.mxu1 %v4442_v53 }
 0x264   : > { %3983 = vmatpush1.bf16.msra.mxu1 %v3982_v46 }
 0x265   : > { %3984 = vmatprep.subr.bf16.mxu1 %v4442_v53 }
 0x268   : > { %3986 = vmatpush1.bf16.msra.mxu1 %v3985_v49  ;;  %v1579_v49 = vld [vmem:[%s6096_s5] sm:$0xff] }
 0x269   : > { %3987 = vmatprep.subr.bf16.mxu1 %v4442_v53 }
 0x26c   : > { %3989 = vmatpush1.bf16.msra.mxu1 %v3988_v52  ;;  %v4024_v52 = vpack.c.bf16 %v1581_v50, %v1579_v49  ;;  %v3395_v50 = vld [vmem:[%s6096_s5 + $0x1a0] sm:$0xff] }
 0x26d   : > { %3990 = vmatprep.subr.bf16.mxu1 %v4442_v53 }
 0x270   : > { %3992 = vmatpush1.bf16.msra.mxu1 %v3991_v56  ;;  %v1584_v56 = vld [vmem:[%s6096_s5 + $0x28] sm:$0xff] }
 0x271   : > { %3993 = vmatprep.subr.bf16.mxu1 %v4442_v53 }
 0x274   : > { %3995 = vmatpush1.bf16.msra.mxu1 %v3994_v59 }
 0x275   : > { %3996 = vmatprep.subr.bf16.mxu1 %v4442_v53 }
 0x278   : > { %3998 = vmatpush1.bf16.msra.mxu1 %v3997_v62 }
 0x279   : > { %3999 = vmatprep.subr.bf16.mxu1 %v4442_v53 }
 0x27c   : > { %4001 = vmatpush1.bf16.msra.mxu1 %v4000_v1 }
 0x27d   : > { %1542 = vmatprep.subr.mxu1 %v4440_v7 }
 0x280   : > { %1543 = vmatpush1.msra.mxu1 %v3354_v2  ;;  %v4026_v2 = vpack.c.bf16 %v1586_v57, %v1584_v56  ;;  %v3399_v57 = vld [vmem:[%s6096_s5 + $0x1c0] sm:$0xff] }
 0x281   : > { %1567 = vmatmul.mubr.f32.vlgmr.msra.gmra.mrb[12].mxu1 %v1373_v30  ;;  %4003 = vmatprep.subr.bf16.mxu1 %v4002_v6  ;;  %v4016_v30 = vpack.c.bf16 %v3371_v29, %v3369_v28  ;;  %v1588_v6 = vld [vmem:[%s6096_s5 + $0x48] sm:$0xff]  ;;  %v1595_v29 = vld [vmem:[%s6096_s5 + $0x80] sm:$0xff] }
 0x282   : > { %3356 = vmatprep.mubr.msk.f32.mxu1 %vm1398_vm5, %v1376_v39  ;;  %4005 = vmatpush1.bf16.msra.mxu1 %v4004_v11  ;;  %v1580_v39 = vld [vmem:[%s6096_s5 + $0x8] sm:$0xff]  ;;  %v4030_v15 = vpack.c.bf16 %v1590_v8, %v1588_v6  ;;  %v3414_v6 = vld [vmem:[%s6096_s5 + $0x218] sm:$0xff] }
 0x283   : > { %4007 = vmatprep.subr.bf16.mxu1 %v4006_v12  ;;  %v4022_v41 = vpack.c.bf16 %v1582_v40, %v1580_v39  ;;  %v4028_v12 = vpack.c.bf16 %v1585_v4, %v1583_v3  ;;  %v1599_v39 = vld [vmem:[%s6096_s5 + $0xa0] sm:$0xf]  ;;  %v3405_v3 = vld [vmem:[%s6096_s5 + $0x1f0] sm:$0xff]  ;;  %v3416_v8 = vld [vmem:[%s6096_s5 + $0x228] sm:$0xff] }
 0x285   : > { %1572 = vmatmul.mubr.f32.gmra.mrb[14].mxu1 %v1375_v37  ;;  %v3378_v37 = vld [vmem:[%s6096_s5 + $0x158] sm:$0xf] }
 0x286   : > { %1705 = vmatprep.mubr.f32.mxu1 %v4440_v7  ;;  %4009 = vmatpush1.bf16.msra.mxu1 %v4008_v20  ;;  %v1594_v20 = vld [vmem:[%s6096_s5 + $0x78] sm:$0xff] }
 0x287   : > { %4011 = vmatprep.subr.bf16.mxu1 %v4010_v21  ;;  %v4032_v21 = vpack.c.bf16 %v1589_v18, %v1587_v17  ;;  %v4034_v22 = vpack.c.bf16 %v1594_v20, %v1592_v19  ;;  %v3418_v17 = vld [vmem:[%s6096_s5 + $0x238] sm:$0xff]  ;;  %v3420_v18 = vld [vmem:[%s6096_s5 + $0x248] sm:$0xff]  ;;  %v3407_v19 = vld [vmem:[%s6096_s5 + $0x200] sm:$0xf]  ;;  %v4062_v20 = vpack.c.bf16 %v3416_v8, %v3414_v6 }
 0x288   : > { %v3453_v6 = vld [vmem:[%s6096_s5 + $0x330] sm:$0xff]  ;;  %v3456_v8 = vld [vmem:[%s6096_s5 + $0x348] sm:$0xff] }
 0x28a   : > { %4013 = vmatpush1.bf16.msra.mxu1 %v4012_v26  ;;  %v1598_v26 = vld [vmem:[%s6096_s5 + $0x98] sm:$0xff] }
 0x28b   : > { %4015 = vmatprep.subr.bf16.mxu1 %v4014_v27  ;;  %v4036_v27 = vpack.c.bf16 %v1593_v24, %v1591_v23  ;;  %v4038_v28 = vpack.c.bf16 %v1598_v26, %v1596_v25  ;;  %v3417_v23 = vld [vmem:[%s6096_s5 + $0x230] sm:$0xff]  ;;  %v3419_v24 = vld [vmem:[%s6096_s5 + $0x240] sm:$0xff]  ;;  %v3422_v25 = vld [vmem:[%s6096_s5 + $0x258] sm:$0xff] }
 0x28c   : > { %v3424_v26 = vld [vmem:[%s6096_s5 + $0x268] sm:$0xff] }
 0x28e   : > { %4017 = vmatpush1.bf16.msra.mxu1 %v4016_v30  ;;  %v1597_v30 = vld [vmem:[%s6096_s5 + $0x90] sm:$0xff] }
 0x28f   : > { %4019 = vmatprep.subr.bf16.mxu1 %v4018_v33  ;;  %v4040_v31 = vpack.c.bf16 %v1597_v30, %v1595_v29  ;;  %v3388_v33 = vld [vmem:[%s6096_s5 + $0x168] sm:$0xff]  ;;  %v3421_v29 = vld [vmem:[%s6096_s5 + $0x250] sm:$0xff]  ;;  %v3423_v30 = vld [vmem:[%s6096_s5 + $0x260] sm:$0xff] }
 0x290   : > { %v4042_v40 = vpack.c.bf16 %v3390_v34, %v3388_v33  ;;  %v3425_v34 = vld [vmem:[%s6096_s5 + $0x270] sm:$0xff] }
 0x292   : > { %4021 = vmatpush1.bf16.msra.mxu1 %v4020_v36  ;;  %v3389_v36 = vld [vmem:[%s6096_s5 + $0x170] sm:$0xff] }
 0x293   : > { %3379 = vmatprep.subr.msk.mxu1 %vm1203_vm1, %v3378_v37  ;;  %v3392_v37 = vld [vmem:[%s6096_s5 + $0x188] sm:$0xff] }
 0x296   : > { %3380 = vmatpush1.msk.msra.mxu1 %vm1203_vm1, %v3377_v38  ;;  %v3394_v38 = vld [vmem:[%s6096_s5 + $0x198] sm:$0xff] }
 0x297   : > { %4023 = vmatprep.subr.bf16.mxu1 %v4022_v41  ;;  %v4044_v41 = vpack.c.bf16 %v3389_v36, %v3387_v35  ;;  %v3427_v35 = vld [vmem:[%s6096_s5 + $0x280] sm:$0xff]  ;;  %v3430_v36 = vld [vmem:[%s6096_s5 + $0x298] sm:$0xff] }
 0x32a   : > { %v1471_v42 = vpop.f32.mrb[8].mxu1 }
 0x32b   : > { %v1473_v43 = vpop.f32.mrb[9].mxu1 }
 0x32c   : > { %v3391_v43 = vld [vmem:[%s6096_s5 + $0x180] sm:$0xff] }
 0x32e   : > { %v1476_v44 = vpop.f32.mrb[10].mxu1 }
 0x32f   : > { %v1478_v45 = vpop.f32.mrb[11].mxu1 }
 0x330   : > { %v3396_v45 = vld [vmem:[%s6096_s5 + $0x1a8] sm:$0xff] }
 0x354   : > { %v1568_v46 = vpop.f32.mrb[12].mxu1 }
 0x355   : > { %v5261_v47 = vmax.f32 %v1471_v42, %v1568_v46  ;;  %v1570_v48 = vpop.f32.mrb[13].mxu1  ;;  %v4046_v42 = vpack.c.bf16 %v3394_v38, %v3392_v37  ;;  %v3398_v46 = vld [vmem:[%s6096_s5 + $0x1b8] sm:$0xff]  ;;  %v4076_v37 = vpack.c.bf16 %v3427_v35, %v3425_v34  ;;  %v2340_v34 = vld [vmem:[%s6099_s8 + $0x8] sm:$0xff] }
 0x356   : > { %v4050_v49 = vpack.c.bf16 %v3398_v46, %v3396_v45  ;;  %v3439_v45 = vld [vmem:[%s6096_s5 + $0x2c0] sm:$0xff]  ;;  %v3441_v46 = vld [vmem:[%s6096_s5 + $0x2d0] sm:$0xff]  ;;  %v3468_v35 = vld [vmem:[%s6098_s7 + $0x8] sm:$0x1f] }
 0x357   : > { %v1627_v58 = vrot.slane %v5261_v47, 1  ;;  %v1829_v59 = vrot.slane %v5261_v47, 2  ;;  %v1947_v60 = vrot.slane %v5261_v47, 3  ;;  %v2064_v61 = vrot.slane %v5261_v47, 4 }
 0x358   : > { %v1573_v51 = vpop.f32.mrb[14].mxu1 }
 0x359   : > { %v5269_v54 = vmax.f32 %v1476_v44, %v1573_v51  ;;  %v1575_v55 = vpop.f32.mrb[15].mxu1  ;;  %v3393_v44 = vld [vmem:[%s6096_s5 + $0x190] sm:$0xff] }
 0x35a   : > { %v4048_v48 = vpack.c.bf16 %v3393_v44, %v3391_v43  ;;  %v3397_v51 = vld [vmem:[%s6096_s5 + $0x1b0] sm:$0xff]  ;;  %v3440_v43 = vld [vmem:[%s6096_s5 + $0x2c8] sm:$0xff]  ;;  %v3442_v44 = vld [vmem:[%s6096_s5 + $0x2d8] sm:$0xff] }
 0x35b   : > { %v1628_v62 = vrot.slane %v5269_v54, 1  ;;  %v1830_v63 = vrot.slane %v5269_v54, 2  ;;  %v1948_v0 = vrot.slane %v5269_v54, 3  ;;  %v2065_v1 = vrot.slane %v5269_v54, 4 }
 0x35c   : > { %v4052_v55 = vpack.c.bf16 %v3397_v51, %v3395_v50  ;;  %v3433_v50 = vld [vmem:[%s6096_s5 + $0x2b0] sm:$0xf]  ;;  %v4082_v51 = vpack.c.bf16 %v3442_v44, %v3440_v43  ;;  %v2346_v43 = vld [vmem:[%s6099_s8 + $0x38] sm:$0xff] }
 0x35d   : > { %v1629_v5 = vsel %vm1626_vm6, %v1627_v58, %v1628_v62  ;;  %v5301_v9 = vsel %vm1828_vm8, %v1829_v59, %v1830_v63  ;;  %v5306_v10 = vsel %vm1946_vm9, %v1947_v60, %v1948_v0  ;;  %v5311_v11 = vsel %vm1203_vm1, %v2064_v61, %v2065_v1  ;;  %v3401_v58 = vld [vmem:[%s6096_s5 + $0x1d0] sm:$0xff]  ;;  %v3404_v59 = vld [vmem:[%s6096_s5 + $0x1e8] sm:$0xff]  ;;  %v3406_v60 = vld [vmem:[%s6096_s5 + $0x1f8] sm:$0xff] }
 0x35e   : > { %3381 = vmatmul.mubr.msk.f32.vlgmr.msra.gmra.mrb[16].mxu1 %vm1630_vm7, %v1629_v5  ;;  %v4056_v61 = vpack.c.bf16 %v3401_v58, %v3399_v57  ;;  %v3408_v5 = vld [vmem:[%s6096_s5 + $0x208] sm:$0xf]  ;;  %v3450_v58 = vld [vmem:[%s6096_s5 + $0x318] sm:$0xff] }
 0x35f   : > { %4025 = vmatpush1.bf16.msra.mxu1 %v4024_v52  ;;  %1711 = vmatprep.mubr.f32.mxu1 %v4440_v7  ;;  %v3400_v52 = vld [vmem:[%s6096_s5 + $0x1c8] sm:$0xff] }
 0x360   : > { %4027 = vmatprep.subr.bf16.mxu1 %v4026_v2  ;;  %v3403_v2 = vld [vmem:[%s6096_s5 + $0x1e0] sm:$0xff]  ;;  %v3448_v57 = vld [vmem:[%s6096_s5 + $0x308] sm:$0xff] }
 0x361   : > { %v4060_v4 = vpack.c.bf16 %v3405_v3, %v3403_v2  ;;  %v3452_v2 = vld [vmem:[%s6096_s5 + $0x328] sm:$0xff] }
 0x362   : > { %3382 = vmatmul.mubr.msk.f32.gmra.mrb[18].mxu1 %vm1630_vm7, %v1628_v62  ;;  %v4058_v62 = vpack.c.bf16 %v3406_v60, %v3404_v59  ;;  %v4090_v60 = vpack.c.bf16 %v3450_v58, %v3448_v57  ;;  %v2354_v57 = vld [vmem:[%s6099_s8 + $0x78] sm:$0xff] }
 0x363   : > { %4029 = vmatpush1.bf16.msra.mxu1 %v4028_v12  ;;  %1792 = vmatprep.mubr.f32.mxu1 %v4440_v7  ;;  %v3413_v12 = vld [vmem:[%s6096_s5 + $0x210] sm:$0xff] }
 0x364   : > { %4031 = vmatprep.subr.bf16.mxu1 %v4030_v15  ;;  %v3415_v15 = vld [vmem:[%s6096_s5 + $0x220] sm:$0xff] }
 0x367   : > { %4033 = vmatpush1.bf16.msra.mxu1 %v4032_v21  ;;  %v4064_v21 = vpack.c.bf16 %v3415_v15, %v3413_v12 }
 0x368   : > { %4035 = vmatprep.subr.bf16.mxu1 %v4034_v22  ;;  %v4066_v22 = vpack.c.bf16 %v3420_v18, %v3418_v17  ;;  %v3455_v17 = vld [vmem:[%s6096_s5 + $0x340] sm:$0xff]  ;;  %v3457_v18 = vld [vmem:[%s6096_s5 + $0x350] sm:$0xff] }
 0x36b   : > { %4037 = vmatpush1.bf16.msra.mxu1 %v4036_v27  ;;  %v4068_v27 = vpack.c.bf16 %v3419_v24, %v3417_v23 }
 0x36c   : > { %4039 = vmatprep.subr.bf16.mxu1 %v4038_v28  ;;  %v4070_v28 = vpack.c.bf16 %v3424_v26, %v3422_v25 }
 0x36f   : > { %4041 = vmatpush1.bf16.msra.mxu1 %v4040_v31  ;;  %v3426_v31 = vld [vmem:[%s6096_s5 + $0x278] sm:$0xff] }
 0x370   : > { %3383 = vmatprep.subr.msk.mxu1 %vm1203_vm1, %v1600_v32  ;;  %v4072_v32 = vpack.c.bf16 %v3423_v30, %v3421_v29 }
 0x373   : > { %3384 = vmatpush1.msk.msra.mxu1 %vm1203_vm1, %v1599_v39  ;;  %v3429_v39 = vld [vmem:[%s6096_s5 + $0x290] sm:$0xff] }
 0x374   : > { %3385 = vmatmul.mubr.msk.f32.vlgmr.msra.gmra.mrb[16].mxu1 %vm1630_vm7, %v5261_v47  ;;  %4043 = vmatprep.subr.bf16.mxu1 %v4042_v40  ;;  %v3402_v47 = vld [vmem:[%s6096_s5 + $0x1d8] sm:$0xff]  ;;  %v3431_v40 = vld [vmem:[%s6096_s5 + $0x2a0] sm:$0xff] }
 0x375   : > { %4045 = vmatpush1.bf16.msra.mxu1 %v4044_v41  ;;  %1798 = vmatprep.mubr.f32.mxu1 %v4440_v7  ;;  %v4054_v56 = vpack.c.bf16 %v3402_v47, %v3400_v52  ;;  %v4080_v41 = vpack.c.bf16 %v3431_v40, %v3429_v39  ;;  %v4084_v52 = vpack.c.bf16 %v3441_v46, %v3439_v45  ;;  %v2343_v39 = vld [vmem:[%s6099_s8 + $0x20] sm:$0xff]  ;;  %v2344_v40 = vld [vmem:[%s6099_s8 + $0x28] sm:$0xff] }
 0x376   : > { %4047 = vmatprep.subr.bf16.mxu1 %v4046_v42  ;;  %v3434_v42 = vld [vmem:[%s6096_s5 + $0x2b8] sm:$0xf]  ;;  %v2347_v45 = vld [vmem:[%s6099_s8 + $0x40] sm:$0xff]  ;;  %v2348_v46 = vld [vmem:[%s6099_s8 + $0x48] sm:$0xff] }
 0x378   : > { %3386 = vmatmul.mubr.msk.f32.gmra.mrb[18].mxu1 %vm1630_vm7, %v5269_v54 }
 0x379   : > { %4049 = vmatpush1.bf16.msra.mxu1 %v4048_v48  ;;  %1906 = vmatprep.mubr.f32.mxu1 %v4440_v7  ;;  %v3444_v48 = vld [vmem:[%s6096_s5 + $0x2e8] sm:$0xff] }
 0x37a   : > { %4051 = vmatprep.subr.bf16.mxu1 %v4050_v49  ;;  %v3446_v49 = vld [vmem:[%s6096_s5 + $0x2f8] sm:$0xff] }
 0x37b   : > { %v4086_v47 = vpack.c.bf16 %v3446_v49, %v3444_v48  ;;  %v4127_v48 = vpack.c.bf16 %v2348_v46, %v2347_v45  ;;  %v2349_v49 = vld [vmem:[%s6099_s8 + $0x50] sm:$0xff]  ;;  %v3496_v45 = vld [vmem:[%s6100_s9 + $0x60] sm:$0xff]  ;;  %v3497_v46 = vld [vmem:[%s6100_s9 + $0x68] sm:$0xff] }
 0x37d   : > { %4053 = vmatpush1.bf16.msra.mxu1 %v4052_v55  ;;  %v3443_v55 = vld [vmem:[%s6096_s5 + $0x2e0] sm:$0xff] }
 0x37e   : > { %4055 = vmatprep.subr.bf16.mxu1 %v4054_v56  ;;  %v3445_v56 = vld [vmem:[%s6096_s5 + $0x2f0] sm:$0xff] }
 0x37f   : > { %v4088_v59 = vpack.c.bf16 %v3445_v56, %v3443_v55  ;;  %v2353_v56 = vld [vmem:[%s6099_s8 + $0x70] sm:$0xff] }
 0x380   : > { %v4136_v58 = vpack.c.bf16 %v2354_v57, %v2353_v56  ;;  %v2531_v57 = vld [vmem:[%s6100_s9 + $0x30] sm:$0xff] }
 0x381   : > { %4057 = vmatpush1.bf16.msra.mxu1 %v4056_v61  ;;  %v3447_v61 = vld [vmem:[%s6096_s5 + $0x300] sm:$0xff] }
 0x382   : > { %4059 = vmatprep.subr.bf16.mxu1 %v4058_v62  ;;  %v3449_v62 = vld [vmem:[%s6096_s5 + $0x310] sm:$0xff] }
 0x383   : > { %v4092_v3 = vpack.c.bf16 %v3449_v62, %v3447_v61  ;;  %v2357_v62 = vld [vmem:[%s6099_s8 + $0x90] sm:$0xff] }
 0x385   : > { %4061 = vmatpush1.bf16.msra.mxu1 %v4060_v4 }
 0x386   : > { %3409 = vmatprep.subr.msk.mxu1 %vm1203_vm1, %v3408_v5  ;;  %v3451_v5 = vld [vmem:[%s6096_s5 + $0x320] sm:$0xff] }
 0x387   : > { %v4096_v12 = vpack.c.bf16 %v3453_v6, %v3451_v5  ;;  %v3473_v5 = vld [vmem:[%s6099_s8 + $0xa0] sm:$0xff]  ;;  %v3474_v6 = vld [vmem:[%s6099_s8 + $0xa8] sm:$0xff] }
 0x389   : > { %3410 = vmatpush1.msk.msra.mxu1 %vm1203_vm1, %v3407_v19  ;;  %v4100_v19 = vpack.c.bf16 %v3457_v18, %v3455_v17  ;;  %v4145_v17 = vpack.c.bf16 %v3474_v6, %v3473_v5  ;;  %v3475_v18 = vld [vmem:[%s6099_s8 + $0xb0] sm:$0xff]  ;;  %v3503_v5 = vld [vmem:[%s6100_s9 + $0x98] sm:$0xff] }
 0x38a   : > { %3411 = vmatmul.mubr.msk.f32.vlgmr.msra.gmra.mrb[16].mxu1 %vm1630_vm7, %v5301_v9  ;;  %4063 = vmatprep.subr.bf16.mxu1 %v4062_v20  ;;  %v3428_v9 = vld [vmem:[%s6096_s5 + $0x288] sm:$0xff] }
 0x38b   : > { %4065 = vmatpush1.bf16.msra.mxu1 %v4064_v21  ;;  %1912 = vmatprep.mubr.f32.mxu1 %v4440_v7  ;;  %v4074_v33 = vpack.c.bf16 %v3428_v9, %v3426_v31  ;;  %v3460_v20 = vld [vmem:[%s6096_s5 + $0x368] sm:$0xf]  ;;  %v3459_v21 = vld [vmem:[%s6096_s5 + $0x360] sm:$0xf] }
 0x38c   : > { %4067 = vmatprep.subr.bf16.mxu1 %v4066_v22  ;;  %v2158_v22 = vld [vmem:[%s6097_s6] sm:$0x3] }
 0x38d   : > { %v2163_v23 = vrot.slane %v2158_v22, %v1170_v14  ;;  %v2167_v25 = vrot.slane %v2158_v22, %v1174_v16  ;;  %v2339_v16 = vld [vmem:[%s6099_s8] sm:$0xff]  ;;  %v3478_v22 = vld [vmem:[%s6099_s8 + $0xc8] sm:$0xff] }
 0x38e   : > { %3412 = vmatmul.mubr.msk.f32.gmra.mrb[18].mxu1 %vm1630_vm7, %v1830_v63  ;;  %v3432_v63 = vld [vmem:[%s6096_s5 + $0x2a8] sm:$0xff] }
 0x38f   : > { %4069 = vmatpush1.bf16.msra.mxu1 %v4068_v27  ;;  %2024 = vmatprep.mubr.f32.mxu1 %v4440_v7  ;;  %v4078_v38 = vpack.c.bf16 %v3432_v63, %v3430_v36  ;;  %v4115_v36 = vpack.c.bf16 %v2340_v34, %v2339_v16  ;;  %v2341_v63 = vld [vmem:[%s6099_s8 + $0x10] sm:$0xff]  ;;  %v3490_v16 = vld [vmem:[%s6099_s8 + $0x128] sm:$0xff] }
 0x390   : > { %4071 = vmatprep.subr.bf16.mxu1 %v4070_v28 }
 0x393   : > { %4073 = vmatpush1.bf16.msra.mxu1 %v4072_v32 }
 0x394   : > { %4075 = vmatprep.subr.bf16.mxu1 %v4074_v33 }
 0x397   : > { %4077 = vmatpush1.bf16.msra.mxu1 %v4076_v37  ;;  %v2342_v37 = vld [vmem:[%s6099_s8 + $0x18] sm:$0xff] }
 0x398   : > { %4079 = vmatprep.subr.bf16.mxu1 %v4078_v38  ;;  %v4118_v38 = vpack.c.bf16 %v2342_v37, %v2341_v63  ;;  %v2525_v37 = vld [vmem:[%s6100_s9] sm:$0xff] }
 0x39b   : > { %4081 = vmatpush1.bf16.msra.mxu1 %v4080_v41  ;;  %v4121_v41 = vpack.c.bf16 %v2344_v40, %v2343_v39  ;;  %v3494_v39 = vld [vmem:[%s6100_s9 + $0x50] sm:$0xff] }
 0x39c   : > { %3435 = vmatprep.subr.msk.mxu1 %vm1203_vm1, %v3434_v42  ;;  %v2345_v42 = vld [vmem:[%s6099_s8 + $0x30] sm:$0xff] }
 0x39d   : > { %v4124_v44 = vpack.c.bf16 %v2346_v43, %v2345_v42  ;;  %v2527_v42 = vld [vmem:[%s6100_s9 + $0x10] sm:$0xff]  ;;  %v2528_v43 = vld [vmem:[%s6100_s9 + $0x18] sm:$0xff] }
 0x39f   : > { %3436 = vmatpush1.msk.msra.mxu1 %vm1203_vm1, %v3433_v50  ;;  %v2350_v50 = vld [vmem:[%s6099_s8 + $0x58] sm:$0xff] }
 0x3a0   : > { %3437 = vmatmul.mubr.msk.f32.vlgmr.msra.gmra.mrb[16].mxu1 %vm1630_vm7, %v5306_v10  ;;  %4083 = vmatprep.subr.bf16.mxu1 %v4082_v51  ;;  %v3454_v10 = vld [vmem:[%s6096_s5 + $0x338] sm:$0xff]  ;;  %v4130_v51 = vpack.c.bf16 %v2350_v50, %v2349_v49  ;;  %v4178_v49 = vpack.c.bf16 %v3497_v46, %v3496_v45  ;;  %v2529_v50 = vld [vmem:[%s6100_s9 + $0x20] sm:$0xff]  ;;  %v3530_v46 = vld [vmem:[%s6100_s9 + $0x150] sm:$0xff] }
 0x3a1   : > { %4085 = vmatpush1.bf16.msra.mxu1 %v4084_v52  ;;  %2030 = vmatprep.mubr.f32.mxu1 %v4440_v7  ;;  %v4094_v4 = vpack.c.bf16 %v3454_v10, %v3452_v2  ;;  %v2351_v52 = vld [vmem:[%s6099_s8 + $0x60] sm:$0xff]  ;;  %v2358_v2 = vld [vmem:[%s6099_s8 + $0x98] sm:$0xff] }
 0x3a2   : > { %4087 = vmatprep.subr.bf16.mxu1 %v4086_v47  ;;  %v2352_v47 = vld [vmem:[%s6099_s8 + $0x68] sm:$0xff]  ;;  %v4142_v10 = vpack.c.bf16 %v2358_v2, %v2357_v62  ;;  %v2533_v2 = vld [vmem:[%s6100_s9 + $0x40] sm:$0xff] }
 0x3a3   : > { %v4133_v55 = vpack.c.bf16 %v2352_v47, %v2351_v52  ;;  %v3498_v52 = vld [vmem:[%s6100_s9 + $0x70] sm:$0xff]  ;;  %v3499_v47 = vld [vmem:[%s6100_s9 + $0x78] sm:$0xff] }
 0x3a4   : > { %3438 = vmatmul.mubr.msk.f32.gmra.mrb[18].mxu1 %vm1630_vm7, %v1948_v0  ;;  %v3458_v0 = vld [vmem:[%s6096_s5 + $0x358] sm:$0xff]  ;;  %v4181_v56 = vpack.c.bf16 %v3499_v47, %v3498_v52  ;;  %v3534_v47 = vld [vmem:[%s6100_s9 + $0x170] sm:$0xff] }
 0x3a5   : > { %4089 = vmatpush1.bf16.msra.mxu1 %v4088_v59  ;;  %2141 = vmatprep.mubr.f32.mxu1 %v4440_v7  ;;  %v4098_v15 = vpack.c.bf16 %v3458_v0, %v3456_v8  ;;  %v2355_v59 = vld [vmem:[%s6099_s8 + $0x80] sm:$0xff] }
 0x3a6   : > { %4091 = vmatprep.subr.bf16.mxu1 %v4090_v60  ;;  %v2356_v60 = vld [vmem:[%s6099_s8 + $0x88] sm:$0xff] }
 0x3a7   : > { %v4139_v61 = vpack.c.bf16 %v2356_v60, %v2355_v59  ;;  %v3500_v59 = vld [vmem:[%s6100_s9 + $0x80] sm:$0xff]  ;;  %v3501_v60 = vld [vmem:[%s6100_s9 + $0x88] sm:$0xff] }
 0x3a8   : > { %v4184_v62 = vpack.c.bf16 %v3501_v60, %v3500_v59 }
 0x3a9   : > { %4093 = vmatpush1.bf16.msra.mxu1 %v4092_v3 }
 0x3aa   : > { %4095 = vmatprep.subr.bf16.mxu1 %v4094_v4 }
 0x3ad   : > { %4097 = vmatpush1.bf16.msra.mxu1 %v4096_v12 }
 0x3ae   : > { %4099 = vmatprep.subr.bf16.mxu1 %v4098_v15 }
 0x3b1   : > { %4101 = vmatpush1.bf16.msra.mxu1 %v4100_v19  ;;  %v3476_v19 = vld [vmem:[%s6099_s8 + $0xb8] sm:$0xff] }
 0x3b2   : > { %3461 = vmatprep.subr.msk.mxu1 %vm1203_vm1, %v3460_v20  ;;  %v4148_v20 = vpack.c.bf16 %v3476_v19, %v3475_v18  ;;  %v3507_v18 = vld [vmem:[%s6100_s9 + $0xa8] sm:$0xff] }
 0x3b5   : > { %3462 = vmatpush1.msk.msra.mxu1 %vm1203_vm1, %v3459_v21  ;;  %v3477_v21 = vld [vmem:[%s6099_s8 + $0xc0] sm:$0xff] }
 0x3b6   : > { %3463 = vmatmul.mubr.msk.f32.vlgmr.msra.gmra.mrb[16].mxu1 %vm1630_vm7, %v5311_v11  ;;  %4174 = vmatprep.subr.bf16.mxu1 %v4442_v53 }
 0x3b7   : > { %2147 = vmatprep.mubr.f32.mxu1 %v4440_v7 }
 0x3ba   : > { %3464 = vmatmul.mubr.msk.f32.gmra.mrb[18].mxu1 %vm1630_vm7, %v2065_v1 }
 0x3bb   : > { %3649 = vmatprep.mubr.msk.f32.mxu1 %vm4443_vm14, %v4440_v7 }
 0x489   : > { %v2143_v24 = vpop.f32.mrb[16].mxu1 }
 0x48a   : > { %v2145_v11 = vpop.f32.mrb[17].mxu1  ;;  %v2170_v26 = vadd.f32 %v2163_v23, %v2143_v24  ;;  %v3479_v24 = vld [vmem:[%s6099_s8 + $0xd0] sm:$0xff] }
 0x48b   : > { %v2171_v27 = vadd.f32 %v2167_v25, %v2145_v11 }
 0x48c   : > { %v2174_v1 = vmax.f32 %v2170_v26, 0.0  ;;  %v3481_v26 = vld [vmem:[%s6099_s8 + $0xe0] sm:$0xff] }
 0x48d   : > { %v2149_v28 = vpop.f32.mrb[18].mxu1  ;;  %v2175_v9 = vmax.f32 %v2171_v27, 0.0  ;;  %v3482_v27 = vld [vmem:[%s6099_s8 + $0xe8] sm:$0xff] }
 0x48e   : > { %v2172_v29 = vadd.f32 %v2163_v23, %v2149_v28  ;;  %v2151_v30 = vpop.f32.mrb[19].mxu1  ;;  %v4151_v23 = vpack.c.bf16 %v3478_v22, %v3477_v21  ;;  %v4157_v28 = vpack.c.bf16 %v3482_v27, %v3481_v26  ;;  %v3508_v26 = vld [vmem:[%s6100_s9 + $0xb0] sm:$0xff]  ;;  %v3509_v27 = vld [vmem:[%s6100_s9 + $0xb8] sm:$0xff] }
 0x48f   : > { %v2173_v54 = vadd.f32 %v2167_v25, %v2151_v30  ;;  %v3480_v25 = vld [vmem:[%s6099_s8 + $0xd8] sm:$0xff] }
 0x490   : > { %v2176_v31 = vmax.f32 %v2172_v29, 0.0  ;;  %v4154_v11 = vpack.c.bf16 %v3480_v25, %v3479_v24  ;;  %v3483_v29 = vld [vmem:[%s6099_s8 + $0xf0] sm:$0xff]  ;;  %v3484_v30 = vld [vmem:[%s6099_s8 + $0xf8] sm:$0xff]  ;;  %v3520_v24 = vld [vmem:[%s6100_s9 + $0x108] sm:$0xff] }
 0x491   : > { %v2177_v32 = vmax.f32 %v2173_v54, 0.0  ;;  %v4160_v54 = vpack.c.bf16 %v3484_v30, %v3483_v29  ;;  %v3521_v29 = vld [vmem:[%s6100_s9 + $0x110] sm:$0xff]  ;;  %v3522_v30 = vld [vmem:[%s6100_s9 + $0x118] sm:$0xff] }
 0x492   : > { %v4105_v33 = vpack.c.bf16 %v2176_v31, %v2174_v1  ;;  %v3485_v1 = vld [vmem:[%s6099_s8 + $0x100] sm:$0xff]  ;;  %v3486_v31 = vld [vmem:[%s6099_s8 + $0x108] sm:$0xff] }
 0x493   : > { %v4102_v14 = vpack.c.bf16 %v2177_v32, %v2175_v9  ;;  %v4163_v9 = vpack.c.bf16 %v3486_v31, %v3485_v1  ;;  %v3487_v32 = vld [vmem:[%s6099_s8 + $0x110] sm:$0xff]  ;;  %v3510_v1 = vld [vmem:[%s6100_s9 + $0xc0] sm:$0xff]  ;;  %v3511_v31 = vld [vmem:[%s6100_s9 + $0xc8] sm:$0xff] }
 0x495   : > { %4104 = vmatprep.subr.msk.bf16.mxu0 %vm4103_vm11, %v4102_v14 }
 0x496   : > { %4107 = vmatpush1.bf16.msk.msra.mxu0 %vm4103_vm11, %v4105_v33 }
 0x497   : > { %4110 = vmatprep.subr.msk.bf16.mxu0 %vm4103_vm11, %v4102_v14 }
 0x499   : > { %3467 = vmatmul.mubr.msk.f32.vlgmr.msra.gmra.mrb[8].mxu0 %vm2179_vm12, %v2178_v13  ;;  %v3489_v13 = vld [vmem:[%s6099_s8 + $0x120] sm:$0xff] }
 0x49a   : > { %4113 = vmatpush1.bf16.msk.msra.mxu0 %vm4103_vm11, %v4105_v33  ;;  %2330 = vmatprep.mubr.f32.mxu0 %v4440_v7  ;;  %v3488_v33 = vld [vmem:[%s6099_s8 + $0x118] sm:$0xff]  ;;  %v4169_v34 = vpack.c.bf16 %v3490_v16, %v3489_v13  ;;  %v3512_v13 = vld [vmem:[%s6100_s9 + $0xd0] sm:$0xff] }
 0x49b   : > { %4114 = vmatprep.subr.bf16.mxu0 %v4442_v53  ;;  %v4166_v14 = vpack.c.bf16 %v3488_v33, %v3487_v32  ;;  %v3523_v32 = vld [vmem:[%s6100_s9 + $0x120] sm:$0xff]  ;;  %v3524_v33 = vld [vmem:[%s6100_s9 + $0x128] sm:$0xff]  ;;  %v3513_v16 = vld [vmem:[%s6100_s9 + $0xd8] sm:$0xff] }
 0x49d   : > { %3471 = vmatmul.mubr.msk.f32.vlgmr.msra.gmra.mrb[10].mxu0 %vm2179_vm12, %v3468_v35  ;;  %v3491_v35 = vld [vmem:[%s6099_s8 + $0x130] sm:$0xff] }
 0x49e   : > { %4116 = vmatpush1.bf16.msra.mxu0 %v4115_v36  ;;  %v3492_v36 = vld [vmem:[%s6099_s8 + $0x138] sm:$0xff] }
 0x49f   : > { %4117 = vmatprep.subr.bf16.mxu0 %v4442_v53  ;;  %v4172_v63 = vpack.c.bf16 %v3492_v36, %v3491_v35  ;;  %v3525_v35 = vld [vmem:[%s6100_s9 + $0x130] sm:$0xff]  ;;  %v3526_v36 = vld [vmem:[%s6100_s9 + $0x138] sm:$0xff] }
 0x4a2   : > { %4119 = vmatpush1.bf16.msra.mxu0 %v4118_v38  ;;  %v2526_v38 = vld [vmem:[%s6100_s9 + $0x8] sm:$0xff] }
 0x4a3   : > { %4120 = vmatprep.subr.bf16.mxu0 %v4442_v53  ;;  %v4190_v40 = vpack.c.bf16 %v2526_v38, %v2525_v37  ;;  %v3514_v37 = vld [vmem:[%s6100_s9 + $0xe0] sm:$0xff]  ;;  %v3515_v38 = vld [vmem:[%s6100_s9 + $0xe8] sm:$0xff] }
 0x4a6   : > { %4122 = vmatpush1.bf16.msra.mxu0 %v4121_v41  ;;  %v3495_v41 = vld [vmem:[%s6100_s9 + $0x58] sm:$0xff] }
 0x4a7   : > { %4123 = vmatprep.subr.bf16.mxu0 %v4442_v53 }
 0x4aa   : > { %4125 = vmatpush1.bf16.msra.mxu0 %v4124_v44  ;;  %v4175_v44 = vpack.c.bf16 %v3495_v41, %v3494_v39  ;;  %v4232_v39 = vpack.c.bf16 %v3526_v36, %v3525_v35  ;;  %v3528_v41 = vld [vmem:[%s6100_s9 + $0x140] sm:$0xff] }
 0x4ab   : > { %4126 = vmatprep.subr.bf16.mxu0 %v4442_v53 }
 0x4ac   : > { %4176 = vmatpush3.bf16.msra.mxu1 %v4175_v44 }
 0x4ad   : > { %4177 = vmatprep.subr.bf16.mxu1 %v4442_v53 }
 0x4ae   : > { %4128 = vmatpush1.bf16.msra.mxu0 %v4127_v48  ;;  %v4193_v48 = vpack.c.bf16 %v2528_v43, %v2527_v42  ;;  %v3529_v42 = vld [vmem:[%s6100_s9 + $0x148] sm:$0xff] }
 0x4af   : > { %4129 = vmatprep.subr.bf16.mxu0 %v4442_v53  ;;  %v4235_v44 = vpack.c.bf16 %v3529_v42, %v3528_v41 }
 0x4b0   : > { %4179 = vmatpush3.bf16.msra.mxu1 %v4178_v49 }
 0x4b1   : > { %4180 = vmatprep.subr.bf16.mxu1 %v4442_v53 }
 0x4b2   : > { %4131 = vmatpush1.bf16.msra.mxu0 %v4130_v51  ;;  %v2530_v51 = vld [vmem:[%s6100_s9 + $0x28] sm:$0xff] }
 0x4b3   : > { %4132 = vmatprep.subr.bf16.mxu0 %v4442_v53 }
 0x4b4   : > { %4182 = vmatpush3.bf16.msra.mxu1 %v4181_v56 }
 0x4b5   : > { %4183 = vmatprep.subr.bf16.mxu1 %v4442_v53 }
 0x4b6   : > { %4134 = vmatpush1.bf16.msra.mxu0 %v4133_v55  ;;  %v4196_v55 = vpack.c.bf16 %v2530_v51, %v2529_v50  ;;  %v3532_v50 = vld [vmem:[%s6100_s9 + $0x160] sm:$0xff]  ;;  %v3533_v51 = vld [vmem:[%s6100_s9 + $0x168] sm:$0xff] }
 0x4b7   : > { %4135 = vmatprep.subr.bf16.mxu0 %v4442_v53  ;;  %v4241_v52 = vpack.c.bf16 %v3533_v51, %v3532_v50  ;;  %v3052_v51 = vld [vmem:[%s6104_s13 + $0x50] sm:$0xf] }
 0x4b8   : > { %4185 = vmatpush3.bf16.msra.mxu1 %v4184_v62  ;;  %v2952_v62 = vld [vmem:[%s6102_s11 + $0x8] sm:$0xff] }
 0x4b9   : > { %4186 = vmatprep.subr.bf16.mxu1 %v4442_v53 }
 0x4ba   : > { %4137 = vmatpush1.bf16.msra.mxu0 %v4136_v58  ;;  %v2532_v58 = vld [vmem:[%s6100_s9 + $0x38] sm:$0xff] }
 0x4bb   : > { %4138 = vmatprep.subr.bf16.mxu0 %v4442_v53 }
 0x4be   : > { %4140 = vmatpush1.bf16.msra.mxu0 %v4139_v61  ;;  %v4199_v61 = vpack.c.bf16 %v2532_v58, %v2531_v57  ;;  %v3536_v57 = vld [vmem:[%s6100_s9 + $0x180] sm:$0xff]  ;;  %v3537_v58 = vld [vmem:[%s6100_s9 + $0x188] sm:$0xff] }
 0x4bf   : > { %4141 = vmatprep.subr.bf16.mxu0 %v4442_v53  ;;  %v4247_v59 = vpack.c.bf16 %v3537_v58, %v3536_v57 }
 0x4c2   : > { %4143 = vmatpush1.bf16.msra.mxu0 %v4142_v10  ;;  %v2534_v10 = vld [vmem:[%s6100_s9 + $0x48] sm:$0xff] }
 0x4c3   : > { %4144 = vmatprep.subr.bf16.mxu0 %v4442_v53 }
 0x56c   : > { %v2256_v3 = vpop.f32.mrb[8].mxu0 }
 0x56d   : > { %v2258_v4 = vpop.f32.mrb[9].mxu0 }
 0x570   : > { %v2332_v8 = vpop.f32.mrb[10].mxu0 }
 0x571   : > { %v2337_v0 = vmax.f32 %v2256_v3, %v2332_v8  ;;  %v2334_v12 = vpop.f32.mrb[11].mxu0  ;;  %v4202_v3 = vpack.c.bf16 %v2534_v10, %v2533_v2  ;;  %v2953_v10 = vld [vmem:[%s6102_s11 + $0x10] sm:$0xff] }
 0x572   : > { %v2338_v15 = vmax.f32 %v2258_v4, %v2334_v12  ;;  %v3502_v4 = vld [vmem:[%s6100_s9 + $0x90] sm:$0xff] }
 0x573   : > { %v4187_v6 = vpack.c.bf16 %v3503_v5, %v3502_v4  ;;  %v3517_v12 = vld [vmem:[%s6100_s9 + $0xf0] sm:$0xff]  ;;  %v2955_v5 = vld [vmem:[%s6102_s11 + $0x20] sm:$0xff] }
 0x574   : > { %3472 = vmatprep.mubr.msk.f32.mxu0 %vm2359_vm13, %v2338_v15 }
 0x575   : > { %2428 = vmatmul.mubr.f32.vlgmr.msra.gmra.mrb[12].mxu0 %v2337_v0  ;;  %4188 = vmatpush3.bf16.msra.mxu1 %v4187_v6  ;;  %v2956_v6 = vld [vmem:[%s6102_s11 + $0x28] sm:$0xff] }
 0x576   : > { %4146 = vmatpush1.bf16.msra.mxu0 %v4145_v17  ;;  %3493 = vmatprep.mubr.msk.f32.mxu0 %vm2359_vm13, %v2338_v15  ;;  %v3518_v15 = vld [vmem:[%s6100_s9 + $0xf8] sm:$0xff]  ;;  %v3506_v17 = vld [vmem:[%s6100_s9 + $0xa0] sm:$0xff] }
 0x577   : > { %4147 = vmatprep.subr.bf16.mxu0 %v4442_v53  ;;  %4204 = vmatprep.subr.bf16.mxu1 %v4442_v53  ;;  %v4205_v25 = vpack.c.bf16 %v3507_v18, %v3506_v17  ;;  %v2959_v17 = vld [vmem:[%s6102_s11 + $0x40] sm:$0xff]  ;;  %v2960_v18 = vld [vmem:[%s6102_s11 + $0x48] sm:$0xff] }
 0x57a   : > { %4149 = vmatpush1.bf16.msra.mxu0 %v4148_v20  ;;  %v4220_v20 = vpack.c.bf16 %v3518_v15, %v3517_v12  ;;  %v2958_v12 = vld [vmem:[%s6102_s11 + $0x38] sm:$0xff] }
 0x57b   : > { %4150 = vmatprep.subr.bf16.mxu0 %v4442_v53 }
 0x57e   : > { %4152 = vmatpush1.bf16.msra.mxu0 %v4151_v23  ;;  %v3519_v23 = vld [vmem:[%s6100_s9 + $0x100] sm:$0xff] }
 0x57f   : > { %4153 = vmatprep.subr.bf16.mxu0 %v4442_v53 }
 0x582   : > { %4155 = vmatpush1.bf16.msra.mxu0 %v4154_v11 }
 0x583   : > { %4156 = vmatprep.subr.bf16.mxu0 %v4442_v53 }
 0x586   : > { %4158 = vmatpush1.bf16.msra.mxu0 %v4157_v28  ;;  %v4223_v28 = vpack.c.bf16 %v3520_v24, %v3519_v23  ;;  %v2963_v23 = vld [vmem:[%s6102_s11 + $0x60] sm:$0xff]  ;;  %v2964_v24 = vld [vmem:[%s6102_s11 + $0x68] sm:$0xff] }
 0x587   : > { %4159 = vmatprep.subr.bf16.mxu0 %v4442_v53 }
 0x58a   : > { %4161 = vmatpush1.bf16.msra.mxu0 %v4160_v54  ;;  %v4208_v54 = vpack.c.bf16 %v3509_v27, %v3508_v26  ;;  %v3042_v26 = vld [vmem:[%s6104_s13] sm:$0xff]  ;;  %v3043_v27 = vld [vmem:[%s6104_s13 + $0x8] sm:$0xff] }
 0x58b   : > { %4162 = vmatprep.subr.bf16.mxu0 %v4442_v53 }
 0x58e   : > { %4164 = vmatpush1.bf16.msra.mxu0 %v4163_v9  ;;  %v4226_v9 = vpack.c.bf16 %v3522_v30, %v3521_v29  ;;  %v4271_v29 = vpack.c.bf16 %v3043_v27, %v3042_v26  ;;  %v3045_v30 = vld [vmem:[%s6104_s13 + $0x18] sm:$0xff] }
 0x58f   : > { %4165 = vmatprep.subr.bf16.mxu0 %v4442_v53 }
 0x592   : > { %4167 = vmatpush1.bf16.msra.mxu0 %v4166_v14  ;;  %v4211_v14 = vpack.c.bf16 %v3511_v31, %v3510_v1  ;;  %v3046_v1 = vld [vmem:[%s6104_s13 + $0x20] sm:$0xff]  ;;  %v3047_v31 = vld [vmem:[%s6104_s13 + $0x28] sm:$0xff] }
 0x593   : > { %4168 = vmatprep.subr.bf16.mxu0 %v4442_v53 }
 0x596   : > { %4170 = vmatpush1.bf16.msra.mxu0 %v4169_v34  ;;  %v4229_v34 = vpack.c.bf16 %v3524_v33, %v3523_v32  ;;  %v3048_v32 = vld [vmem:[%s6104_s13 + $0x30] sm:$0xff]  ;;  %v3049_v33 = vld [vmem:[%s6104_s13 + $0x38] sm:$0xff] }
 0x597   : > { %4171 = vmatprep.subr.bf16.mxu0 %v4442_v53 }
 0x59a   : > { %4173 = vmatpush1.bf16.msra.mxu0 %v4172_v63  ;;  %v4214_v63 = vpack.c.bf16 %v3513_v16, %v3512_v13 }
 0x59b   : > { %4189 = vmatprep.subr.bf16.mxu0 %v4442_v53 }
 0x59d   : > { %2519 = vmatmul.mubr.f32.vlgmr.msra.gmra.mrb[14].mxu0 %v2337_v0 }
 0x59e   : > { %4191 = vmatpush3.bf16.msra.mxu0 %v4190_v40  ;;  %3672 = vmatprep.mubr.msk.f32.mxu0 %vm4443_vm14, %v4440_v7  ;;  %v4217_v40 = vpack.c.bf16 %v3515_v38, %v3514_v37 }
 0x59f   : > { %4192 = vmatprep.subr.bf16.mxu0 %v4442_v53 }
 0x5a2   : > { %4194 = vmatpush3.bf16.msra.mxu0 %v4193_v48  ;;  %v3531_v48 = vld [vmem:[%s6100_s9 + $0x158] sm:$0xff] }
 0x5a3   : > { %4195 = vmatprep.subr.bf16.mxu0 %v4442_v53  ;;  %v4238_v49 = vpack.c.bf16 %v3531_v48, %v3530_v46  ;;  %v3050_v48 = vld [vmem:[%s6104_s13 + $0x40] sm:$0xff] }
 0x5a6   : > { %4197 = vmatpush3.bf16.msra.mxu0 %v4196_v55  ;;  %v3535_v55 = vld [vmem:[%s6100_s9 + $0x178] sm:$0xff] }
 0x5a7   : > { %4198 = vmatprep.subr.bf16.mxu0 %v4442_v53  ;;  %v4244_v56 = vpack.c.bf16 %v3535_v55, %v3534_v47 }
 0x5aa   : > { %4200 = vmatpush3.bf16.msra.mxu0 %v4199_v61  ;;  %v2951_v61 = vld [vmem:[%s6102_s11] sm:$0xff] }
 0x5ab   : > { %4201 = vmatprep.subr.bf16.mxu0 %v4442_v53  ;;  %v4250_v2 = vpack.c.bf16 %v2952_v62, %v2951_v61 }
 0x5ae   : > { %4203 = vmatpush3.bf16.msra.mxu0 %v4202_v3  ;;  %v2954_v3 = vld [vmem:[%s6102_s11 + $0x18] sm:$0xff] }
 0x5af   : > { %4219 = vmatprep.subr.bf16.mxu0 %v4442_v53  ;;  %v4253_v4 = vpack.c.bf16 %v2954_v3, %v2953_v10 }
 0x648   : > { %v2429_v8 = vpop.f32.mrb[12].mxu0 }
 0x649   : > { %v2431_v0 = vpop.f32.mrb[13].mxu0 }
 0x64a   : > { %v2957_v0 = vld [vmem:[%s6102_s11 + $0x30] sm:$0xff] }
 0x64b   : > { %v4259_v15 = vpack.c.bf16 %v2958_v12, %v2957_v0 }
 0x670   : > { %v2520_v19 = vpop.f32.mrb[14].mxu0 }
 0x671   : > { %v5828_v21 = vmax.f32 %v2429_v8, %v2520_v19  ;;  %v2522_v22 = vpop.f32.mrb[15].mxu0  ;;  %v4256_v8 = vpack.c.bf16 %v2956_v6, %v2955_v5  ;;  %v4262_v19 = vpack.c.bf16 %v2960_v18, %v2959_v17 }
 0x673   : > { %v2547_v11 = vrot.slane %v5828_v21, 1  ;;  %3673 = vmatmul.mubr.msk.f32.vlgmr.msra.gmra.mrb[16].mxu0 %vm2548_vm15, %v5828_v21  ;;  %v2789_v43 = vrot.slane %v5828_v21, 3  ;;  %v2704_v45 = vrot.slane %v5828_v21, 2  ;;  %v2874_v60 = vrot.slane %v5828_v21, 4  ;;  %v2962_v21 = vld [vmem:[%s6102_s11 + $0x58] sm:$0xff] }
 0x674   : > { %4221 = vmatpush3.bf16.msra.mxu0 %v4220_v20  ;;  %3718 = vmatprep.mubr.msk.f32.mxu0 %vm4443_vm14, %v4440_v7  ;;  %v2961_v20 = vld [vmem:[%s6102_s11 + $0x50] sm:$0xff] }
 0x675   : > { %3650 = vmatmul.mubr.msk.f32.vlgmr.msra.gmra.mrb[20].mxu1 %vm2548_vm15, %v2547_v11  ;;  %4222 = vmatprep.subr.bf16.mxu0 %v4442_v53  ;;  %v4265_v22 = vpack.c.bf16 %v2962_v21, %v2961_v20  ;;  %v2965_v11 = vld [vmem:[%s6102_s11 + $0x70] sm:$0xff] }
 0x676   : > { %4206 = vmatpush3.bf16.msra.mxu1 %v4205_v25  ;;  %3695 = vmatprep.mubr.msk.f32.mxu1 %vm4443_vm14, %v4440_v7  ;;  %v4268_v25 = vpack.c.bf16 %v2964_v24, %v2963_v23 }
 0x677   : > { %4207 = vmatprep.subr.bf16.mxu1 %v4442_v53 }
 0x678   : > { %4224 = vmatpush3.bf16.msra.mxu0 %v4223_v28  ;;  %v3044_v28 = vld [vmem:[%s6104_s13 + $0x10] sm:$0xff] }
 0x679   : > { %4225 = vmatprep.subr.bf16.mxu0 %v4442_v53 }
 0x67a   : > { %4209 = vmatpush3.bf16.msra.mxu1 %v4208_v54  ;;  %v4274_v54 = vpack.c.bf16 %v3045_v30, %v3044_v28 }
 0x67b   : > { %4210 = vmatprep.subr.bf16.mxu1 %v4442_v53 }
 0x67c   : > { %4227 = vmatpush3.bf16.msra.mxu0 %v4226_v9  ;;  %v4277_v9 = vpack.c.bf16 %v3047_v31, %v3046_v1 }
 0x67d   : > { %4228 = vmatprep.subr.bf16.mxu0 %v4442_v53 }
 0x67e   : > { %4212 = vmatpush3.bf16.msra.mxu1 %v4211_v14  ;;  %v4280_v14 = vpack.c.bf16 %v3049_v33, %v3048_v32 }
 0x67f   : > { %4213 = vmatprep.subr.bf16.mxu1 %v4442_v53 }
 0x680   : > { %4230 = vmatpush3.bf16.msra.mxu0 %v4229_v34 }
 0x681   : > { %4231 = vmatprep.subr.bf16.mxu0 %v4442_v53 }
 0x682   : > { %4215 = vmatpush3.bf16.msra.mxu1 %v4214_v63 }
 0x683   : > { %4216 = vmatprep.subr.bf16.mxu1 %v4442_v53 }
 0x684   : > { %4233 = vmatpush3.bf16.msra.mxu0 %v4232_v39 }
 0x685   : > { %4249 = vmatprep.subr.bf16.mxu0 %v4442_v53 }
 0x686   : > { %4218 = vmatpush3.bf16.msra.mxu1 %v4217_v40 }
 0x687   : > { %3719 = vmatmul.mubr.msk.f32.vlgmr.msra.gmra.mrb[18].mxu0 %vm2548_vm15, %v2789_v43  ;;  %4234 = vmatprep.subr.bf16.mxu1 %v4442_v53  ;;  %v2948_v43 = vld [vmem:[%s6101_s10] sm:$0x1] }
 0x688   : > { %3774 = vmatprep.mubr.msk.f32.mxu0 %vm4443_vm14, %v4440_v7  ;;  %4251 = vmatpush3.bf16.msra.mxu0 %v4250_v2 }
 0x689   : > { %3696 = vmatmul.mubr.msk.f32.vlgmr.msra.gmra.mrb[22].mxu1 %vm2548_vm15, %v2704_v45  ;;  %4252 = vmatprep.subr.bf16.mxu0 %v4442_v53 }
 0x68a   : > { %4236 = vmatpush3.bf16.msra.mxu1 %v4235_v44  ;;  %3741 = vmatprep.mubr.msk.f32.mxu1 %vm4443_vm14, %v4440_v7 }
 0x68b   : > { %4237 = vmatprep.subr.bf16.mxu1 %v4442_v53 }
 0x68c   : > { %4254 = vmatpush3.bf16.msra.mxu0 %v4253_v4 }
 0x68d   : > { %4255 = vmatprep.subr.bf16.mxu0 %v4442_v53 }
 0x68e   : > { %4239 = vmatpush3.bf16.msra.mxu1 %v4238_v49  ;;  %v3051_v49 = vld [vmem:[%s6104_s13 + $0x48] sm:$0xff] }
 0x68f   : > { %4240 = vmatprep.subr.bf16.mxu1 %v4442_v53  ;;  %v4283_v50 = vpack.c.bf16 %v3051_v49, %v3050_v48 }
 0x690   : > { %4257 = vmatpush3.bf16.msra.mxu0 %v4256_v8 }
 0x691   : > { %4258 = vmatprep.subr.bf16.mxu0 %v4442_v53 }
 0x692   : > { %4242 = vmatpush3.bf16.msra.mxu1 %v4241_v52  ;;  %v2966_v52 = vld [vmem:[%s6103_s12] sm:$0x1] }
 0x693   : > { %4243 = vmatprep.subr.bf16.mxu1 %v4442_v53 }
 0x694   : > { %4260 = vmatpush3.bf16.msra.mxu0 %v4259_v15 }
 0x695   : > { %4261 = vmatprep.subr.bf16.mxu0 %v4442_v53 }
 0x696   : > { %4245 = vmatpush3.bf16.msra.mxu1 %v4244_v56 }
 0x697   : > { %4246 = vmatprep.subr.bf16.mxu1 %v4442_v53 }
 0x698   : > { %4263 = vmatpush3.bf16.msra.mxu0 %v4262_v19 }
 0x699   : > { %4264 = vmatprep.subr.bf16.mxu0 %v4442_v53 }
 0x69a   : > { %4248 = vmatpush3.bf16.msra.mxu1 %v4247_v59 }
 0x69b   : > { %4270 = vmatprep.subr.bf16.mxu1 %v4442_v53 }
 0x69c   : > { %4266 = vmatpush3.bf16.msra.mxu0 %v4265_v22 }
 0x69d   : > { %3742 = vmatmul.mubr.msk.f32.vlgmr.msra.gmra.mrb[24].mxu1 %vm2548_vm15, %v2874_v60  ;;  %4267 = vmatprep.subr.bf16.mxu0 %v4442_v53 }
 0x69e   : > { %3799 = vmatprep.mubr.msk.f32.mxu1 %vm4443_vm14, %v4440_v7  ;;  %4272 = vmatpush3.bf16.msra.mxu1 %v4271_v29 }
 0x69f   : > { %4273 = vmatprep.subr.bf16.mxu1 %v4442_v53 }
 0x6a0   : > { %4269 = vmatpush3.bf16.msra.mxu0 %v4268_v25 }
 0x6a1   : > { %3772 = vmatprep.subr.mxu0 %v4440_v7 }
 0x6a2   : > { %4275 = vmatpush3.bf16.msra.mxu1 %v4274_v54 }
 0x6a3   : > { %4276 = vmatprep.subr.bf16.mxu1 %v4442_v53 }
 0x6a4   : > { %3773 = vmatpush3.msra.mxu0 %v2965_v11 }
 0x6a6   : > { %4278 = vmatpush3.bf16.msra.mxu1 %v4277_v9 }
 0x6a7   : > { %4279 = vmatprep.subr.bf16.mxu1 %v4442_v53 }
 0x6aa   : > { %4281 = vmatpush3.bf16.msra.mxu1 %v4280_v14 }
 0x6ab   : > { %4282 = vmatprep.subr.bf16.mxu1 %v4442_v53 }
 0x6ae   : > { %4284 = vmatpush3.bf16.msra.mxu1 %v4283_v50 }
 0x6af   : > { %3797 = vmatprep.subr.mxu1 %v4440_v7  ;;  %v3053_v7 = vld [vmem:[%s6105_s14] sm:$0x1] }
 0x6b2   : > { %3798 = vmatpush3.msk.msra.mxu1 %vm1203_vm1, %v3052_v51  ;;  %vm3130_vm1 = vcmask 73728  }
 0x746   : > { %v2689_v13 = vpop.f32.mrb[16].mxu0 }
 0x747   : > { %v3674_v16 = vpop.f32.mrb[17].mxu0 }
 0x748   : > { %v2617_v34 = vpop.f32.mrb[20].mxu1 }
 0x749   : > { %v2690_v35 = vadd.f32 %v2689_v13, %v2617_v34  ;;  %v3651_v36 = vpop.f32.mrb[21].mxu1 }
 0x75a   : > { %v2858_v63 = vpop.f32.mrb[18].mxu0 }
 0x75b   : > { %v3720_v37 = vpop.f32.mrb[19].mxu0 }
 0x75c   : > { %v2773_v38 = vpop.f32.mrb[22].mxu1 }
 0x75d   : > { %v2777_v39 = vadd.f32 %v2773_v38, %v2690_v35  ;;  %v3697_v40 = vpop.f32.mrb[23].mxu1 }
 0x75f   : > { %v2862_v41 = vadd.f32 %v2858_v63, %v2777_v39 }
 0x770   : > { %v2943_v42 = vpop.f32.mrb[24].mxu1 }
 0x771   : > { %v2947_v44 = vadd.f32 %v2943_v42, %v2862_v41  ;;  %v3743_v45 = vpop.f32.mrb[25].mxu1 }
 0x773   : > { %v2949_v46 = vadd.f32 %v2948_v43, %v2947_v44 }
 0x775   : > { %v2950_v53 = vmax.f32 %v2949_v46, 0.0 }
 0x777   : > { %3775 = vmatmul.mubr.msk.f32.vlgmr.msra.gmra.mrb[20].mxu0 %vm2967_vm0, %v2950_v53 }
 0x84a   : > { %v3037_v47 = vpop.f32.mrb[20].mxu0 }
 0x84b   : > { %v3038_v55 = vadd.f32 %v3037_v47, %v2966_v52  ;;  %v3776_v56 = vpop.f32.mrb[21].mxu0 }
 0x84d   : > { %v3041_v57 = vmax.f32 %v3038_v55, 0.0 }
 0x84f   : > { %3800 = vmatmul.mubr.msk.f32.vlgmr.msra.gmra.mrb[26].mxu1 %vm1630_vm7, %v3041_v57 }
 0x922   : > { %v3126_v58 = vpop.f32.mrb[26].mxu1 }
 0x923   : > { %v3127_v59 = vadd.f32 %v3126_v58, %v3053_v7  ;;  %v3801_v60 = vpop.f32.mrb[27].mxu1 }
 0x925   : > { %3131 = vst.msk [vmem:[%s486_s25] sm:$0x1] %vm3130_vm1, %v3127_v59 }
 0x926   : > { %4389 = shalt.err (!%p4386_p3)
}
 0x927   : > { %s4390_s29 = scalar_lea.hbm %s6049_s27, 16  ;;  %s4394_s25 = scalar_lea.hbm %s6106_s15, 32 }
 0x928   : > { %p4391_p4 = scmp.ne.s32.totalorder %s6049_s27, %s4390_s29  ;;  %p4395_p9 = scmp.lt.u32.totalorder %s6049_s27, %s6106_s15 }
 0x929   : > { %p4396_p10 = scmp.lt.u32.totalorder %s4394_s25, %s4390_s29  ;;  %p4398_p12 = scmp.lt.u32.totalorder %s4390_s29, %s6049_s27 }
 0x92a   : > { %p4392_p7 = pnand %p4391_p4, %p4563_p5 }
 0x92b   : > { %p4397_p11 = por %p4396_p10, %p4395_p9 }
 0x92c   : > { %p4393_p8 = pneg %p4392_p7 }
 0x92d   : > { %p4399_p13 = por %p4398_p12, %p4397_p11 }
 0x92f   : > { %p4400_p0 = pnand %p4399_p13, %p4393_p8 }
 0x931   : > { %4403 = shalt.err (!%p4400_p0)
}
 0x932   : > { %4333 = dma.vmem_to_hbm [thread:$0]  (%p4563_p5), %s6051_s26, 16, %s6049_s27, %s3133_s24  }
 0x933 PF: > { %s6121_s17 = sld [smem:[#allocation7_spill]]  ;;  %s6122_s22 = sld [smem:[#allocation5_spill]] }
 0x939   : > { %p4339_p1 = scmp.ge.s32.totalorder %s6121_s17, 2  ;;  %s3157_s18 = sand.u32 1, %s6122_s22  }
 0x93a   : > { %s3158_s30 = scalar_lea.sflag [#allocation3], %s3157_s18 }
 0x93b   : > { %p4336_p2 = pnand %p4339_p1, %p4567_p6 }
 0x93d   : > { %4421 = dma.done.wait (!%p4336_p2), %s3158_s30, 16  }
 0x93e   : > { %4423 = vsyncadd (!%p4336_p2), %s3158_s30, 4294967280  ;;  %s6124_s21 = sld [smem:[#allocation8_spill]]  ;;  %s6125_s29 = sld [smem:[#allocation6_spill]] }
 0x93f   : > { %s6126_s20 = sld [smem:[#allocation9_spill]]  ;;  %s6127_s18 = smov %s4430_s19 }
 0x944   : > { %p25_p3 = scmp.ge.s32.totalorder %s6124_s21, 4   ;;  %s6128_s19 = smov %s6125_s29 }
 0x946   :  { %27 = sbr.rel (!%p25_p3) target bundleno = 3 (0x3), region = 131 }
 0x94d   :  { %3162 = vsyncpa [#allocation3], 1 }
 0x94e   :  { %3164 = vsyncpa [#allocation3 + $0x1], 1 }

</bundles_post_ra>
